<compile_context>
chip_gen: v5e
topology: v5e:2x2
jax: 0.10.0
libtpu: 0.0.40
codegen_flags: <defaults>
</compile_context>

<pallas_src>
import math

import jax
import jax.numpy as jnp
from jax.experimental import pallas as pl
from jax.experimental.pallas import tpu as pltpu

# Model config (TransformerBlock(embed_dim=32, num_heads=4, mlp_ratio=2.0, dropout=0.1))
EMBED_DIM = 32
NUM_HEADS = 4
MLP_RATIO = 2.0
HEAD_DIM = EMBED_DIM // NUM_HEADS
HIDDEN = int(EMBED_DIM * MLP_RATIO)
LN_EPS = 1e-5
_VEC_W = 3 * EMBED_DIM          # packed param-vector row width (max of E, 3E, HIDDEN)


def _erf(x):
    # Abramowitz & Stegun 7.1.26 (|err| < 1.5e-7); elementwise exp/mul only -> clean Mosaic
    # lowering. Matches torch's exact-erf GELU to ~1e-6.
    a1, a2, a3, a4, a5 = 0.254829592, -0.284496736, 1.421413741, -1.453152027, 1.061405429
    p = 0.3275911
    ax = jnp.abs(x)
    t = 1.0 / (1.0 + p * ax)
    poly = ((((a5 * t + a4) * t + a3) * t + a2) * t + a1) * t
    y = 1.0 - poly * jnp.exp(-ax * ax)
    return jnp.where(x >= 0.0, y, -y)


def _gelu(x):
    # Exact (erf-based) GELU, matching PyTorch nn.GELU(approximate='none').
    return 0.5 * x * (1.0 + _erf(x * (1.0 / math.sqrt(2.0))))


def _layernorm(x, g, b):
    mu = jnp.mean(x, axis=-1, keepdims=True)
    var = jnp.mean((x - mu) ** 2, axis=-1, keepdims=True)
    return (x - mu) * jax.lax.rsqrt(var + LN_EPS) * g + b


def _softmax(x):
    m = jnp.max(x, axis=-1, keepdims=True)
    e = jnp.exp(x - m)
    return e / jnp.sum(e, axis=-1, keepdims=True)


def transformer_block_kernel(x_ref,        # (L, N, E)  input, PyTorch (seq, batch, embed)
                             win_ref,      # (E, 3E)    in_proj_weight.T, Q cols pre-scaled
                             wout_ref,     # (E, E)     out_proj.weight.T
                             w1_ref,       # (E, H)     mlp fc1 weight.T
                             w2_ref,       # (H, E)     mlp fc2 weight.T
                             vec_ref,      # (8, 96)    packed g1,b1,g2,b2,bin,bout,bb1,bb2
                             o_ref):       # (L, N, E)
    L, N, E = x_ref.shape
    x3 = x_ref[...].astype(jnp.float32)                                # (L, N, E)

    g1 = vec_ref[0:1, 0:E]
    b1 = vec_ref[1:2, 0:E]
    g2 = vec_ref[2:3, 0:E]
    b2 = vec_ref[3:4, 0:E]
    bqkv = vec_ref[4:5, 0:3 * E]                                       # Q part pre-scaled
    bout = vec_ref[5:6, 0:E]
    bm1 = vec_ref[6:7, 0:HIDDEN]
    bm2 = vec_ref[7:8, 0:E]

    # ---------------- attention branch ----------------
    # LN1 + QKV projection on all N*L rows at once.
    xf = x3.reshape(L * N, E)                                          # row = l*N + n
    xn = _layernorm(xf, g1, b1)
    qkv = jnp.dot(xn, win_ref[...],
                  preferred_element_type=jnp.float32) + bqkv           # (L*N, 3E)
    qkv3 = qkv.reshape(L, N, 3 * E)

    for n in range(N):                                                 # static unroll: batches
        attn = jnp.zeros((L, E), jnp.float32)
        for h in range(NUM_HEADS):                                     # static unroll: heads
            q = qkv3[:, n, h * HEAD_DIM:(h + 1) * HEAD_DIM]            # already scaled
            k = qkv3[:, n, E + h * HEAD_DIM:E + (h + 1) * HEAD_DIM]
            v = qkv3[:, n, 2 * E + h * HEAD_DIM:2 * E + (h + 1) * HEAD_DIM]
            s = jax.lax.dot_general(q, k, (((1,), (1,)), ((), ())),
                                    preferred_element_type=jnp.float32)   # (L, L) = q @ k^T
            p = _softmax(s)                                            # attn dropout: identity
            pv = jnp.dot(p, v, preferred_element_type=jnp.float32)     # (L, D)
            # out_proj folded into the head loop -> no lane concatenate of head outputs.
            attn = attn + jnp.dot(pv, wout_ref[h * HEAD_DIM:(h + 1) * HEAD_DIM, :],
                                  preferred_element_type=jnp.float32)  # (L, E)
        res1 = x3[:, n, :] + attn + bout                               # residual 1 (+ out_proj bias)
        # Stage residual-1 through the f32 VMEM output ref (acts as scratch).
        o_ref[:, n:n + 1, :] = res1.reshape(L, 1, E).astype(o_ref.dtype)

    # ---------------- MLP branch (flattened over all N*L rows) ----------------
    xr = o_ref[...].astype(jnp.float32).reshape(L * N, E)
    xn2 = _layernorm(xr, g2, b2)
    h1 = _gelu(jnp.dot(xn2, w1_ref[...],
                       preferred_element_type=jnp.float32) + bm1)      # (L*N, H), dropout: identity
    mlp = jnp.dot(h1, w2_ref[...],
                  preferred_element_type=jnp.float32) + bm2            # (L*N, E), dropout: identity
    o_ref[...] = (xr + mlp).reshape(L, N, E).astype(o_ref.dtype)       # residual 2


def transformer_block(x_lne, prepped):
    """x_lne: (L, N, E) float32, PyTorch MultiheadAttention (seq, batch, embed) layout."""
    L, N, E = x_lne.shape
    vmem = pl.BlockSpec(memory_space=pltpu.MemorySpace.VMEM)           # whole arrays in VMEM
    return pl.pallas_call(
        transformer_block_kernel,
        out_shape=jax.ShapeDtypeStruct((L, N, E), x_lne.dtype),
        in_specs=[vmem] * 6,
        out_specs=vmem,
    )(x_lne, *prepped)


def init_params(key, embed_dim=EMBED_DIM, hidden=HIDDEN):
    """Raw parameters in torch-equivalent layout (weights stored as W.T)."""
    ks = jax.random.split(key, 7)

    def w(k, shape, scale=0.02):
        return (scale * jax.random.normal(k, shape)).astype(jnp.float32)

    g1 = jnp.ones((1, embed_dim), jnp.float32)             # LayerNorm default init
    b1 = jnp.zeros((1, embed_dim), jnp.float32)
    win = w(ks[0], (embed_dim, 3 * embed_dim))              # in_proj_weight.T
    bin_ = w(ks[1], (1, 3 * embed_dim))                     # in_proj_bias
    wout = w(ks[2], (embed_dim, embed_dim))                 # out_proj.weight.T
    bout = jnp.zeros((1, embed_dim), jnp.float32)           # out_proj.bias (torch inits to 0)
    g2 = jnp.ones((1, embed_dim), jnp.float32)
    b2 = jnp.zeros((1, embed_dim), jnp.float32)
    w1 = w(ks[3], (embed_dim, hidden))                      # mlp[0].weight.T
    bb1 = w(ks[4], (1, hidden))
    w2 = w(ks[5], (hidden, embed_dim))                      # mlp[3].weight.T
    bb2 = w(ks[6], (1, embed_dim))
    return (g1, b1, win, bin_, wout, bout, g2, b2, w1, bb1, w2, bb2)


def prepare_params(raw):
    """One-time offline transform:
      * fold the 1/sqrt(head_dim) Q-scale into the Q columns of in_proj weight/bias,
      * pack the 8 small bias/affine vectors into a single (8, 96) f32 slab."""
    (g1, b1, win, bin_, wout, bout, g2, b2, w1, bb1, w2, bb2) = raw
    scale = 1.0 / math.sqrt(HEAD_DIM)
    win_s = win.at[:, :EMBED_DIM].multiply(scale)
    bin_s = bin_.at[:, :EMBED_DIM].multiply(scale)

    def row(v):
        v = v.reshape(-1).astype(jnp.float32)
        return jnp.pad(v, (0, _VEC_W - v.shape[0]))

    vec = jnp.stack([row(g1), row(b1), row(g2), row(b2),
                     row(bin_s), row(bout), row(bb1), row(bb2)], axis=0)   # (8, 96)
    return (win_s, wout, w1, w2, vec)


def transformer_block_ref(x, raw):
    """Pure-JAX reference mirroring the PyTorch module's eval-mode forward."""
    (g1, b1, win, bin_, wout, bout, g2, b2, w1, bb1, w2, bb2) = raw
    L, N, E = x.shape

    def ln(v, g, b):
        mu = v.mean(-1, keepdims=True)
        var = ((v - mu) ** 2).mean(-1, keepdims=True)
        return (v - mu) * jax.lax.rsqrt(var + LN_EPS) * g + b

    xn = ln(x, g1, b1)
    qkv = xn @ win + bin_                                     # (L, N, 3E)
    q, k, v = qkv[..., :E], qkv[..., E:2 * E], qkv[..., 2 * E:]
    q = q * (1.0 / math.sqrt(HEAD_DIM))

    def split(t):                                             # (L,N,E) -> (N,H,L,D)
        return t.reshape(L, N, NUM_HEADS, HEAD_DIM).transpose(1, 2, 0, 3)

    qh, kh, vh = split(q), split(k), split(v)
    s = jnp.einsum('nhld,nhmd->nhlm', qh, kh)
    p = jax.nn.softmax(s, axis=-1)
    o = jnp.einsum('nhlm,nhmd->nhld', p, vh)
    o = o.transpose(2, 0, 1, 3).reshape(L, N, E)              # concat heads
    x = x + (o @ wout + bout)                                 # residual 1
    xn2 = ln(x, g2, b2)
    h1 = jax.nn.gelu(xn2 @ w1 + bb1, approximate=False)
    x = x + (h1 @ w2 + bb2)                                   # residual 2
    return x


if __name__ == "__main__":
    key = jax.random.PRNGKey(0)
    kx, kp = jax.random.split(key)
    L, N, E = 8, 2, EMBED_DIM                                 # seq=8, batch=2, embed=32
    x = jax.random.normal(kx, (L, N, E), jnp.float32)
    raw_params = init_params(kp)
    prepped = prepare_params(raw_params)

    out = jax.block_until_ready(transformer_block(x, prepped))
    assert out.shape == (L, N, E) and out.dtype == jnp.float32
    assert bool(jnp.all(jnp.isfinite(out)))

    ref = transformer_block_ref(x, raw_params)
    assert bool(jnp.allclose(out, ref, atol=1e-4, rtol=1e-4)), \
        float(jnp.max(jnp.abs(out - ref)))

    print("KERNEL_OK")
</pallas_src>

<mosaic_0001>
module attributes {stable_mosaic.version = 11 : i64} {
  func.func @transformer_block_kernel(%arg0: memref<8x2x32xf32, #tpu.memory_space<vmem>>, %arg1: memref<32x96xf32, #tpu.memory_space<vmem>>, %arg2: memref<32x32xf32, #tpu.memory_space<vmem>>, %arg3: memref<32x64xf32, #tpu.memory_space<vmem>>, %arg4: memref<64x32xf32, #tpu.memory_space<vmem>>, %arg5: memref<8x96xf32, #tpu.memory_space<vmem>>, %arg6: memref<8x2x32xf32, #tpu.memory_space<vmem>>) attributes {dimension_semantics = [], scalar_prefetch = 0 : i64, scratch_operands = 0 : i64, tpu.core_type = #tpu.core_type<tc>} {
    %c0 = arith.constant 0 : index
    %c0_0 = arith.constant 0 : index
    %c0_1 = arith.constant 0 : index
    %0 = vector.load %arg0[%c0, %c0_0, %c0_1] : memref<8x2x32xf32, #tpu.memory_space<vmem>>, vector<8x2x32xf32>
    %c0_2 = arith.constant 0 : index
    %c0_3 = arith.constant 0 : index
    %1 = vector.load %arg5[%c0_2, %c0_3] : memref<8x96xf32, #tpu.memory_space<vmem>>, vector<1x32xf32>
    %c1 = arith.constant 1 : index
    %c0_4 = arith.constant 0 : index
    %2 = vector.load %arg5[%c1, %c0_4] : memref<8x96xf32, #tpu.memory_space<vmem>>, vector<1x32xf32>
    %c2 = arith.constant 2 : index
    %c0_5 = arith.constant 0 : index
    %3 = vector.load %arg5[%c2, %c0_5] : memref<8x96xf32, #tpu.memory_space<vmem>>, vector<1x32xf32>
    %c3 = arith.constant 3 : index
    %c0_6 = arith.constant 0 : index
    %4 = vector.load %arg5[%c3, %c0_6] : memref<8x96xf32, #tpu.memory_space<vmem>>, vector<1x32xf32>
    %c4 = arith.constant 4 : index
    %c0_7 = arith.constant 0 : index
    %5 = vector.load %arg5[%c4, %c0_7] : memref<8x96xf32, #tpu.memory_space<vmem>>, vector<1x96xf32>
    %c5 = arith.constant 5 : index
    %c0_8 = arith.constant 0 : index
    %6 = vector.load %arg5[%c5, %c0_8] : memref<8x96xf32, #tpu.memory_space<vmem>>, vector<1x32xf32>
    %c6 = arith.constant 6 : index
    %c0_9 = arith.constant 0 : index
    %7 = vector.load %arg5[%c6, %c0_9] : memref<8x96xf32, #tpu.memory_space<vmem>>, vector<1x64xf32>
    %c7 = arith.constant 7 : index
    %c0_10 = arith.constant 0 : index
    %8 = vector.load %arg5[%c7, %c0_10] : memref<8x96xf32, #tpu.memory_space<vmem>>, vector<1x32xf32>
    %9 = vector.shape_cast %0 : vector<8x2x32xf32> to vector<16x32xf32>
    %cst = arith.constant dense<0.000000e+00> : vector<16xf32>
    %10 = vector.multi_reduction <add>, %9, %cst [1] : vector<16x32xf32> to vector<16xf32>
    %11 = vector.shape_cast %10 : vector<16xf32> to vector<16x1xf32>
    %cst_11 = arith.constant 3.200000e+01 : f32
    %12 = vector.broadcast %cst_11 : f32 to vector<16x1xf32>
    %13 = arith.divf %11, %12 : vector<16x1xf32>
    %14 = vector.broadcast %13 : vector<16x1xf32> to vector<16x32xf32>
    %15 = arith.subf %9, %14 : vector<16x32xf32>
    %16 = arith.mulf %15, %15 : vector<16x32xf32>
    %cst_12 = arith.constant dense<0.000000e+00> : vector<16xf32>
    %17 = vector.multi_reduction <add>, %16, %cst_12 [1] : vector<16x32xf32> to vector<16xf32>
    %18 = vector.shape_cast %17 : vector<16xf32> to vector<16x1xf32>
    %cst_13 = arith.constant 3.200000e+01 : f32
    %19 = vector.broadcast %cst_13 : f32 to vector<16x1xf32>
    %20 = arith.divf %18, %19 : vector<16x1xf32>
    %21 = vector.broadcast %13 : vector<16x1xf32> to vector<16x32xf32>
    %22 = arith.subf %9, %21 : vector<16x32xf32>
    %cst_14 = arith.constant 9.99999974E-6 : f32
    %23 = vector.broadcast %cst_14 : f32 to vector<16x1xf32>
    %24 = arith.addf %20, %23 : vector<16x1xf32>
    %25 = math.rsqrt %24 : vector<16x1xf32>
    %26 = vector.broadcast %25 : vector<16x1xf32> to vector<16x32xf32>
    %27 = arith.mulf %22, %26 : vector<16x32xf32>
    %28 = vector.broadcast %1 : vector<1x32xf32> to vector<16x32xf32>
    %29 = arith.mulf %27, %28 : vector<16x32xf32>
    %30 = vector.broadcast %2 : vector<1x32xf32> to vector<16x32xf32>
    %31 = arith.addf %29, %30 : vector<16x32xf32>
    %c0_15 = arith.constant 0 : index
    %c0_16 = arith.constant 0 : index
    %32 = vector.load %arg1[%c0_15, %c0_16] : memref<32x96xf32, #tpu.memory_space<vmem>>, vector<32x96xf32>
    %cst_17 = arith.constant dense<0.000000e+00> : vector<16x96xf32>
    %33 = tpu.matmul %31, %32, %cst_17 {dimension_numbers = #tpu.dot_dimension_numbers<[1], [0], [0], [1], [0, 0, 1, 1], [], []>} : vector<16x32xf32>, vector<32x96xf32>, vector<16x96xf32> -> vector<16x96xf32>
    %34 = vector.broadcast %5 : vector<1x96xf32> to vector<16x96xf32>
    %35 = arith.addf %33, %34 : vector<16x96xf32>
    %36 = vector.shape_cast %35 : vector<16x96xf32> to vector<8x2x96xf32>
    %cst_18 = arith.constant 0.000000e+00 : f32
    %37 = vector.broadcast %cst_18 : f32 to vector<8x32xf32>
    %38 = vector.extract_strided_slice %36 {offsets = [0, 0, 0], sizes = [8, 1, 8], strides = [1, 1, 1]} : vector<8x2x96xf32> to vector<8x1x8xf32>
    %39 = vector.shape_cast %38 : vector<8x1x8xf32> to vector<8x8xf32>
    %40 = vector.extract_strided_slice %36 {offsets = [0, 0, 32], sizes = [8, 1, 8], strides = [1, 1, 1]} : vector<8x2x96xf32> to vector<8x1x8xf32>
    %41 = vector.shape_cast %40 : vector<8x1x8xf32> to vector<8x8xf32>
    %42 = vector.extract_strided_slice %36 {offsets = [0, 0, 64], sizes = [8, 1, 8], strides = [1, 1, 1]} : vector<8x2x96xf32> to vector<8x1x8xf32>
    %43 = vector.shape_cast %42 : vector<8x1x8xf32> to vector<8x8xf32>
    %cst_19 = arith.constant dense<0.000000e+00> : vector<8x8xf32>
    %44 = tpu.matmul %39, %41, %cst_19 {dimension_numbers = #tpu.dot_dimension_numbers<[1], [1], [0], [0], [0, 0, 1, 0], [], []>} : vector<8x8xf32>, vector<8x8xf32>, vector<8x8xf32> -> vector<8x8xf32>
    %cst_20 = arith.constant dense<0xFF800000> : vector<8xf32>
    %45 = vector.multi_reduction <maximumf>, %44, %cst_20 [1] : vector<8x8xf32> to vector<8xf32>
    %46 = vector.shape_cast %45 : vector<8xf32> to vector<8x1xf32>
    %47 = vector.broadcast %46 : vector<8x1xf32> to vector<8x8xf32>
    %48 = arith.subf %44, %47 : vector<8x8xf32>
    %49 = math.exp %48 : vector<8x8xf32>
    %cst_21 = arith.constant dense<0.000000e+00> : vector<8xf32>
    %50 = vector.multi_reduction <add>, %49, %cst_21 [1] : vector<8x8xf32> to vector<8xf32>
    %51 = vector.shape_cast %50 : vector<8xf32> to vector<8x1xf32>
    %52 = vector.broadcast %51 : vector<8x1xf32> to vector<8x8xf32>
    %53 = arith.divf %49, %52 : vector<8x8xf32>
    %cst_22 = arith.constant dense<0.000000e+00> : vector<8x8xf32>
    %54 = tpu.matmul %53, %43, %cst_22 {dimension_numbers = #tpu.dot_dimension_numbers<[1], [0], [0], [1], [0, 0, 1, 1], [], []>} : vector<8x8xf32>, vector<8x8xf32>, vector<8x8xf32> -> vector<8x8xf32>
    %c0_23 = arith.constant 0 : index
    %c0_24 = arith.constant 0 : index
    %55 = vector.load %arg2[%c0_23, %c0_24] : memref<32x32xf32, #tpu.memory_space<vmem>>, vector<8x32xf32>
    %cst_25 = arith.constant dense<0.000000e+00> : vector<8x32xf32>
    %56 = tpu.matmul %54, %55, %cst_25 {dimension_numbers = #tpu.dot_dimension_numbers<[1], [0], [0], [1], [0, 0, 1, 1], [], []>} : vector<8x8xf32>, vector<8x32xf32>, vector<8x32xf32> -> vector<8x32xf32>
    %57 = arith.addf %37, %56 : vector<8x32xf32>
    %58 = vector.extract_strided_slice %36 {offsets = [0, 0, 8], sizes = [8, 1, 8], strides = [1, 1, 1]} : vector<8x2x96xf32> to vector<8x1x8xf32>
    %59 = vector.shape_cast %58 : vector<8x1x8xf32> to vector<8x8xf32>
    %60 = vector.extract_strided_slice %36 {offsets = [0, 0, 40], sizes = [8, 1, 8], strides = [1, 1, 1]} : vector<8x2x96xf32> to vector<8x1x8xf32>
    %61 = vector.shape_cast %60 : vector<8x1x8xf32> to vector<8x8xf32>
    %62 = vector.extract_strided_slice %36 {offsets = [0, 0, 72], sizes = [8, 1, 8], strides = [1, 1, 1]} : vector<8x2x96xf32> to vector<8x1x8xf32>
    %63 = vector.shape_cast %62 : vector<8x1x8xf32> to vector<8x8xf32>
    %cst_26 = arith.constant dense<0.000000e+00> : vector<8x8xf32>
    %64 = tpu.matmul %59, %61, %cst_26 {dimension_numbers = #tpu.dot_dimension_numbers<[1], [1], [0], [0], [0, 0, 1, 0], [], []>} : vector<8x8xf32>, vector<8x8xf32>, vector<8x8xf32> -> vector<8x8xf32>
    %cst_27 = arith.constant dense<0xFF800000> : vector<8xf32>
    %65 = vector.multi_reduction <maximumf>, %64, %cst_27 [1] : vector<8x8xf32> to vector<8xf32>
    %66 = vector.shape_cast %65 : vector<8xf32> to vector<8x1xf32>
    %67 = vector.broadcast %66 : vector<8x1xf32> to vector<8x8xf32>
    %68 = arith.subf %64, %67 : vector<8x8xf32>
    %69 = math.exp %68 : vector<8x8xf32>
    %cst_28 = arith.constant dense<0.000000e+00> : vector<8xf32>
    %70 = vector.multi_reduction <add>, %69, %cst_28 [1] : vector<8x8xf32> to vector<8xf32>
    %71 = vector.shape_cast %70 : vector<8xf32> to vector<8x1xf32>
    %72 = vector.broadcast %71 : vector<8x1xf32> to vector<8x8xf32>
    %73 = arith.divf %69, %72 : vector<8x8xf32>
    %cst_29 = arith.constant dense<0.000000e+00> : vector<8x8xf32>
    %74 = tpu.matmul %73, %63, %cst_29 {dimension_numbers = #tpu.dot_dimension_numbers<[1], [0], [0], [1], [0, 0, 1, 1], [], []>} : vector<8x8xf32>, vector<8x8xf32>, vector<8x8xf32> -> vector<8x8xf32>
    %c8 = arith.constant 8 : index
    %c0_30 = arith.constant 0 : index
    %75 = vector.load %arg2[%c8, %c0_30] : memref<32x32xf32, #tpu.memory_space<vmem>>, vector<8x32xf32>
    %cst_31 = arith.constant dense<0.000000e+00> : vector<8x32xf32>
    %76 = tpu.matmul %74, %75, %cst_31 {dimension_numbers = #tpu.dot_dimension_numbers<[1], [0], [0], [1], [0, 0, 1, 1], [], []>} : vector<8x8xf32>, vector<8x32xf32>, vector<8x32xf32> -> vector<8x32xf32>
    %77 = arith.addf %57, %76 : vector<8x32xf32>
    %78 = vector.extract_strided_slice %36 {offsets = [0, 0, 16], sizes = [8, 1, 8], strides = [1, 1, 1]} : vector<8x2x96xf32> to vector<8x1x8xf32>
    %79 = vector.shape_cast %78 : vector<8x1x8xf32> to vector<8x8xf32>
    %80 = vector.extract_strided_slice %36 {offsets = [0, 0, 48], sizes = [8, 1, 8], strides = [1, 1, 1]} : vector<8x2x96xf32> to vector<8x1x8xf32>
    %81 = vector.shape_cast %80 : vector<8x1x8xf32> to vector<8x8xf32>
    %82 = vector.extract_strided_slice %36 {offsets = [0, 0, 80], sizes = [8, 1, 8], strides = [1, 1, 1]} : vector<8x2x96xf32> to vector<8x1x8xf32>
    %83 = vector.shape_cast %82 : vector<8x1x8xf32> to vector<8x8xf32>
    %cst_32 = arith.constant dense<0.000000e+00> : vector<8x8xf32>
    %84 = tpu.matmul %79, %81, %cst_32 {dimension_numbers = #tpu.dot_dimension_numbers<[1], [1], [0], [0], [0, 0, 1, 0], [], []>} : vector<8x8xf32>, vector<8x8xf32>, vector<8x8xf32> -> vector<8x8xf32>
    %cst_33 = arith.constant dense<0xFF800000> : vector<8xf32>
    %85 = vector.multi_reduction <maximumf>, %84, %cst_33 [1] : vector<8x8xf32> to vector<8xf32>
    %86 = vector.shape_cast %85 : vector<8xf32> to vector<8x1xf32>
    %87 = vector.broadcast %86 : vector<8x1xf32> to vector<8x8xf32>
    %88 = arith.subf %84, %87 : vector<8x8xf32>
    %89 = math.exp %88 : vector<8x8xf32>
    %cst_34 = arith.constant dense<0.000000e+00> : vector<8xf32>
    %90 = vector.multi_reduction <add>, %89, %cst_34 [1] : vector<8x8xf32> to vector<8xf32>
    %91 = vector.shape_cast %90 : vector<8xf32> to vector<8x1xf32>
    %92 = vector.broadcast %91 : vector<8x1xf32> to vector<8x8xf32>
    %93 = arith.divf %89, %92 : vector<8x8xf32>
    %cst_35 = arith.constant dense<0.000000e+00> : vector<8x8xf32>
    %94 = tpu.matmul %93, %83, %cst_35 {dimension_numbers = #tpu.dot_dimension_numbers<[1], [0], [0], [1], [0, 0, 1, 1], [], []>} : vector<8x8xf32>, vector<8x8xf32>, vector<8x8xf32> -> vector<8x8xf32>
    %c16 = arith.constant 16 : index
    %c0_36 = arith.constant 0 : index
    %95 = vector.load %arg2[%c16, %c0_36] : memref<32x32xf32, #tpu.memory_space<vmem>>, vector<8x32xf32>
    %cst_37 = arith.constant dense<0.000000e+00> : vector<8x32xf32>
    %96 = tpu.matmul %94, %95, %cst_37 {dimension_numbers = #tpu.dot_dimension_numbers<[1], [0], [0], [1], [0, 0, 1, 1], [], []>} : vector<8x8xf32>, vector<8x32xf32>, vector<8x32xf32> -> vector<8x32xf32>
    %97 = arith.addf %77, %96 : vector<8x32xf32>
    %98 = vector.extract_strided_slice %36 {offsets = [0, 0, 24], sizes = [8, 1, 8], strides = [1, 1, 1]} : vector<8x2x96xf32> to vector<8x1x8xf32>
    %99 = vector.shape_cast %98 : vector<8x1x8xf32> to vector<8x8xf32>
    %100 = vector.extract_strided_slice %36 {offsets = [0, 0, 56], sizes = [8, 1, 8], strides = [1, 1, 1]} : vector<8x2x96xf32> to vector<8x1x8xf32>
    %101 = vector.shape_cast %100 : vector<8x1x8xf32> to vector<8x8xf32>
    %102 = vector.extract_strided_slice %36 {offsets = [0, 0, 88], sizes = [8, 1, 8], strides = [1, 1, 1]} : vector<8x2x96xf32> to vector<8x1x8xf32>
    %103 = vector.shape_cast %102 : vector<8x1x8xf32> to vector<8x8xf32>
    %cst_38 = arith.constant dense<0.000000e+00> : vector<8x8xf32>
    %104 = tpu.matmul %99, %101, %cst_38 {dimension_numbers = #tpu.dot_dimension_numbers<[1], [1], [0], [0], [0, 0, 1, 0], [], []>} : vector<8x8xf32>, vector<8x8xf32>, vector<8x8xf32> -> vector<8x8xf32>
    %cst_39 = arith.constant dense<0xFF800000> : vector<8xf32>
    %105 = vector.multi_reduction <maximumf>, %104, %cst_39 [1] : vector<8x8xf32> to vector<8xf32>
    %106 = vector.shape_cast %105 : vector<8xf32> to vector<8x1xf32>
    %107 = vector.broadcast %106 : vector<8x1xf32> to vector<8x8xf32>
    %108 = arith.subf %104, %107 : vector<8x8xf32>
    %109 = math.exp %108 : vector<8x8xf32>
    %cst_40 = arith.constant dense<0.000000e+00> : vector<8xf32>
    %110 = vector.multi_reduction <add>, %109, %cst_40 [1] : vector<8x8xf32> to vector<8xf32>
    %111 = vector.shape_cast %110 : vector<8xf32> to vector<8x1xf32>
    %112 = vector.broadcast %111 : vector<8x1xf32> to vector<8x8xf32>
    %113 = arith.divf %109, %112 : vector<8x8xf32>
    %cst_41 = arith.constant dense<0.000000e+00> : vector<8x8xf32>
    %114 = tpu.matmul %113, %103, %cst_41 {dimension_numbers = #tpu.dot_dimension_numbers<[1], [0], [0], [1], [0, 0, 1, 1], [], []>} : vector<8x8xf32>, vector<8x8xf32>, vector<8x8xf32> -> vector<8x8xf32>
    %c24 = arith.constant 24 : index
    %c0_42 = arith.constant 0 : index
    %115 = vector.load %arg2[%c24, %c0_42] : memref<32x32xf32, #tpu.memory_space<vmem>>, vector<8x32xf32>
    %cst_43 = arith.constant dense<0.000000e+00> : vector<8x32xf32>
    %116 = tpu.matmul %114, %115, %cst_43 {dimension_numbers = #tpu.dot_dimension_numbers<[1], [0], [0], [1], [0, 0, 1, 1], [], []>} : vector<8x8xf32>, vector<8x32xf32>, vector<8x32xf32> -> vector<8x32xf32>
    %117 = arith.addf %97, %116 : vector<8x32xf32>
    %118 = vector.extract_strided_slice %0 {offsets = [0, 0, 0], sizes = [8, 1, 32], strides = [1, 1, 1]} : vector<8x2x32xf32> to vector<8x1x32xf32>
    %119 = vector.shape_cast %118 : vector<8x1x32xf32> to vector<8x32xf32>
    %120 = arith.addf %119, %117 : vector<8x32xf32>
    %121 = vector.broadcast %6 : vector<1x32xf32> to vector<8x32xf32>
    %122 = arith.addf %120, %121 : vector<8x32xf32>
    %123 = vector.shape_cast %122 : vector<8x32xf32> to vector<8x1x32xf32>
    %c0_44 = arith.constant 0 : index
    %c0_45 = arith.constant 0 : index
    %c0_46 = arith.constant 0 : index
    %124 = vector.load %arg6[%c0_44, %c0_45, %c0_46] : memref<8x2x32xf32, #tpu.memory_space<vmem>>, vector<8x1x32xf32>
    tpu.vector_store %arg6[%c0_44, %c0_45, %c0_46], %123 {strides = array<i32>} : memref<8x2x32xf32, #tpu.memory_space<vmem>>, vector<8x1x32xf32>,
    %cst_47 = arith.constant 0.000000e+00 : f32
    %125 = vector.broadcast %cst_47 : f32 to vector<8x32xf32>
    %126 = vector.extract_strided_slice %36 {offsets = [0, 1, 0], sizes = [8, 1, 8], strides = [1, 1, 1]} : vector<8x2x96xf32> to vector<8x1x8xf32>
    %127 = vector.shape_cast %126 : vector<8x1x8xf32> to vector<8x8xf32>
    %128 = vector.extract_strided_slice %36 {offsets = [0, 1, 32], sizes = [8, 1, 8], strides = [1, 1, 1]} : vector<8x2x96xf32> to vector<8x1x8xf32>
    %129 = vector.shape_cast %128 : vector<8x1x8xf32> to vector<8x8xf32>
    %130 = vector.extract_strided_slice %36 {offsets = [0, 1, 64], sizes = [8, 1, 8], strides = [1, 1, 1]} : vector<8x2x96xf32> to vector<8x1x8xf32>
    %131 = vector.shape_cast %130 : vector<8x1x8xf32> to vector<8x8xf32>
    %cst_48 = arith.constant dense<0.000000e+00> : vector<8x8xf32>
    %132 = tpu.matmul %127, %129, %cst_48 {dimension_numbers = #tpu.dot_dimension_numbers<[1], [1], [0], [0], [0, 0, 1, 0], [], []>} : vector<8x8xf32>, vector<8x8xf32>, vector<8x8xf32> -> vector<8x8xf32>
    %cst_49 = arith.constant dense<0xFF800000> : vector<8xf32>
    %133 = vector.multi_reduction <maximumf>, %132, %cst_49 [1] : vector<8x8xf32> to vector<8xf32>
    %134 = vector.shape_cast %133 : vector<8xf32> to vector<8x1xf32>
    %135 = vector.broadcast %134 : vector<8x1xf32> to vector<8x8xf32>
    %136 = arith.subf %132, %135 : vector<8x8xf32>
    %137 = math.exp %136 : vector<8x8xf32>
    %cst_50 = arith.constant dense<0.000000e+00> : vector<8xf32>
    %138 = vector.multi_reduction <add>, %137, %cst_50 [1] : vector<8x8xf32> to vector<8xf32>
    %139 = vector.shape_cast %138 : vector<8xf32> to vector<8x1xf32>
    %140 = vector.broadcast %139 : vector<8x1xf32> to vector<8x8xf32>
    %141 = arith.divf %137, %140 : vector<8x8xf32>
    %cst_51 = arith.constant dense<0.000000e+00> : vector<8x8xf32>
    %142 = tpu.matmul %141, %131, %cst_51 {dimension_numbers = #tpu.dot_dimension_numbers<[1], [0], [0], [1], [0, 0, 1, 1], [], []>} : vector<8x8xf32>, vector<8x8xf32>, vector<8x8xf32> -> vector<8x8xf32>
    %c0_52 = arith.constant 0 : index
    %c0_53 = arith.constant 0 : index
    %143 = vector.load %arg2[%c0_52, %c0_53] : memref<32x32xf32, #tpu.memory_space<vmem>>, vector<8x32xf32>
    %cst_54 = arith.constant dense<0.000000e+00> : vector<8x32xf32>
    %144 = tpu.matmul %142, %143, %cst_54 {dimension_numbers = #tpu.dot_dimension_numbers<[1], [0], [0], [1], [0, 0, 1, 1], [], []>} : vector<8x8xf32>, vector<8x32xf32>, vector<8x32xf32> -> vector<8x32xf32>
    %145 = arith.addf %125, %144 : vector<8x32xf32>
    %146 = vector.extract_strided_slice %36 {offsets = [0, 1, 8], sizes = [8, 1, 8], strides = [1, 1, 1]} : vector<8x2x96xf32> to vector<8x1x8xf32>
    %147 = vector.shape_cast %146 : vector<8x1x8xf32> to vector<8x8xf32>
    %148 = vector.extract_strided_slice %36 {offsets = [0, 1, 40], sizes = [8, 1, 8], strides = [1, 1, 1]} : vector<8x2x96xf32> to vector<8x1x8xf32>
    %149 = vector.shape_cast %148 : vector<8x1x8xf32> to vector<8x8xf32>
    %150 = vector.extract_strided_slice %36 {offsets = [0, 1, 72], sizes = [8, 1, 8], strides = [1, 1, 1]} : vector<8x2x96xf32> to vector<8x1x8xf32>
    %151 = vector.shape_cast %150 : vector<8x1x8xf32> to vector<8x8xf32>
    %cst_55 = arith.constant dense<0.000000e+00> : vector<8x8xf32>
    %152 = tpu.matmul %147, %149, %cst_55 {dimension_numbers = #tpu.dot_dimension_numbers<[1], [1], [0], [0], [0, 0, 1, 0], [], []>} : vector<8x8xf32>, vector<8x8xf32>, vector<8x8xf32> -> vector<8x8xf32>
    %cst_56 = arith.constant dense<0xFF800000> : vector<8xf32>
    %153 = vector.multi_reduction <maximumf>, %152, %cst_56 [1] : vector<8x8xf32> to vector<8xf32>
    %154 = vector.shape_cast %153 : vector<8xf32> to vector<8x1xf32>
    %155 = vector.broadcast %154 : vector<8x1xf32> to vector<8x8xf32>
    %156 = arith.subf %152, %155 : vector<8x8xf32>
    %157 = math.exp %156 : vector<8x8xf32>
    %cst_57 = arith.constant dense<0.000000e+00> : vector<8xf32>
    %158 = vector.multi_reduction <add>, %157, %cst_57 [1] : vector<8x8xf32> to vector<8xf32>
    %159 = vector.shape_cast %158 : vector<8xf32> to vector<8x1xf32>
    %160 = vector.broadcast %159 : vector<8x1xf32> to vector<8x8xf32>
    %161 = arith.divf %157, %160 : vector<8x8xf32>
    %cst_58 = arith.constant dense<0.000000e+00> : vector<8x8xf32>
    %162 = tpu.matmul %161, %151, %cst_58 {dimension_numbers = #tpu.dot_dimension_numbers<[1], [0], [0], [1], [0, 0, 1, 1], [], []>} : vector<8x8xf32>, vector<8x8xf32>, vector<8x8xf32> -> vector<8x8xf32>
    %c8_59 = arith.constant 8 : index
    %c0_60 = arith.constant 0 : index
    %163 = vector.load %arg2[%c8_59, %c0_60] : memref<32x32xf32, #tpu.memory_space<vmem>>, vector<8x32xf32>
    %cst_61 = arith.constant dense<0.000000e+00> : vector<8x32xf32>
    %164 = tpu.matmul %162, %163, %cst_61 {dimension_numbers = #tpu.dot_dimension_numbers<[1], [0], [0], [1], [0, 0, 1, 1], [], []>} : vector<8x8xf32>, vector<8x32xf32>, vector<8x32xf32> -> vector<8x32xf32>
    %165 = arith.addf %145, %164 : vector<8x32xf32>
    %166 = vector.extract_strided_slice %36 {offsets = [0, 1, 16], sizes = [8, 1, 8], strides = [1, 1, 1]} : vector<8x2x96xf32> to vector<8x1x8xf32>
    %167 = vector.shape_cast %166 : vector<8x1x8xf32> to vector<8x8xf32>
    %168 = vector.extract_strided_slice %36 {offsets = [0, 1, 48], sizes = [8, 1, 8], strides = [1, 1, 1]} : vector<8x2x96xf32> to vector<8x1x8xf32>
    %169 = vector.shape_cast %168 : vector<8x1x8xf32> to vector<8x8xf32>
    %170 = vector.extract_strided_slice %36 {offsets = [0, 1, 80], sizes = [8, 1, 8], strides = [1, 1, 1]} : vector<8x2x96xf32> to vector<8x1x8xf32>
    %171 = vector.shape_cast %170 : vector<8x1x8xf32> to vector<8x8xf32>
    %cst_62 = arith.constant dense<0.000000e+00> : vector<8x8xf32>
    %172 = tpu.matmul %167, %169, %cst_62 {dimension_numbers = #tpu.dot_dimension_numbers<[1], [1], [0], [0], [0, 0, 1, 0], [], []>} : vector<8x8xf32>, vector<8x8xf32>, vector<8x8xf32> -> vector<8x8xf32>
    %cst_63 = arith.constant dense<0xFF800000> : vector<8xf32>
    %173 = vector.multi_reduction <maximumf>, %172, %cst_63 [1] : vector<8x8xf32> to vector<8xf32>
    %174 = vector.shape_cast %173 : vector<8xf32> to vector<8x1xf32>
    %175 = vector.broadcast %174 : vector<8x1xf32> to vector<8x8xf32>
    %176 = arith.subf %172, %175 : vector<8x8xf32>
    %177 = math.exp %176 : vector<8x8xf32>
    %cst_64 = arith.constant dense<0.000000e+00> : vector<8xf32>
    %178 = vector.multi_reduction <add>, %177, %cst_64 [1] : vector<8x8xf32> to vector<8xf32>
    %179 = vector.shape_cast %178 : vector<8xf32> to vector<8x1xf32>
    %180 = vector.broadcast %179 : vector<8x1xf32> to vector<8x8xf32>
    %181 = arith.divf %177, %180 : vector<8x8xf32>
    %cst_65 = arith.constant dense<0.000000e+00> : vector<8x8xf32>
    %182 = tpu.matmul %181, %171, %cst_65 {dimension_numbers = #tpu.dot_dimension_numbers<[1], [0], [0], [1], [0, 0, 1, 1], [], []>} : vector<8x8xf32>, vector<8x8xf32>, vector<8x8xf32> -> vector<8x8xf32>
    %c16_66 = arith.constant 16 : index
    %c0_67 = arith.constant 0 : index
    %183 = vector.load %arg2[%c16_66, %c0_67] : memref<32x32xf32, #tpu.memory_space<vmem>>, vector<8x32xf32>
    %cst_68 = arith.constant dense<0.000000e+00> : vector<8x32xf32>
    %184 = tpu.matmul %182, %183, %cst_68 {dimension_numbers = #tpu.dot_dimension_numbers<[1], [0], [0], [1], [0, 0, 1, 1], [], []>} : vector<8x8xf32>, vector<8x32xf32>, vector<8x32xf32> -> vector<8x32xf32>
    %185 = arith.addf %165, %184 : vector<8x32xf32>
    %186 = vector.extract_strided_slice %36 {offsets = [0, 1, 24], sizes = [8, 1, 8], strides = [1, 1, 1]} : vector<8x2x96xf32> to vector<8x1x8xf32>
    %187 = vector.shape_cast %186 : vector<8x1x8xf32> to vector<8x8xf32>
    %188 = vector.extract_strided_slice %36 {offsets = [0, 1, 56], sizes = [8, 1, 8], strides = [1, 1, 1]} : vector<8x2x96xf32> to vector<8x1x8xf32>
    %189 = vector.shape_cast %188 : vector<8x1x8xf32> to vector<8x8xf32>
    %190 = vector.extract_strided_slice %36 {offsets = [0, 1, 88], sizes = [8, 1, 8], strides = [1, 1, 1]} : vector<8x2x96xf32> to vector<8x1x8xf32>
    %191 = vector.shape_cast %190 : vector<8x1x8xf32> to vector<8x8xf32>
    %cst_69 = arith.constant dense<0.000000e+00> : vector<8x8xf32>
    %192 = tpu.matmul %187, %189, %cst_69 {dimension_numbers = #tpu.dot_dimension_numbers<[1], [1], [0], [0], [0, 0, 1, 0], [], []>} : vector<8x8xf32>, vector<8x8xf32>, vector<8x8xf32> -> vector<8x8xf32>
    %cst_70 = arith.constant dense<0xFF800000> : vector<8xf32>
    %193 = vector.multi_reduction <maximumf>, %192, %cst_70 [1] : vector<8x8xf32> to vector<8xf32>
    %194 = vector.shape_cast %193 : vector<8xf32> to vector<8x1xf32>
    %195 = vector.broadcast %194 : vector<8x1xf32> to vector<8x8xf32>
    %196 = arith.subf %192, %195 : vector<8x8xf32>
    %197 = math.exp %196 : vector<8x8xf32>
    %cst_71 = arith.constant dense<0.000000e+00> : vector<8xf32>
    %198 = vector.multi_reduction <add>, %197, %cst_71 [1] : vector<8x8xf32> to vector<8xf32>
    %199 = vector.shape_cast %198 : vector<8xf32> to vector<8x1xf32>
    %200 = vector.broadcast %199 : vector<8x1xf32> to vector<8x8xf32>
    %201 = arith.divf %197, %200 : vector<8x8xf32>
    %cst_72 = arith.constant dense<0.000000e+00> : vector<8x8xf32>
    %202 = tpu.matmul %201, %191, %cst_72 {dimension_numbers = #tpu.dot_dimension_numbers<[1], [0], [0], [1], [0, 0, 1, 1], [], []>} : vector<8x8xf32>, vector<8x8xf32>, vector<8x8xf32> -> vector<8x8xf32>
    %c24_73 = arith.constant 24 : index
    %c0_74 = arith.constant 0 : index
    %203 = vector.load %arg2[%c24_73, %c0_74] : memref<32x32xf32, #tpu.memory_space<vmem>>, vector<8x32xf32>
    %cst_75 = arith.constant dense<0.000000e+00> : vector<8x32xf32>
    %204 = tpu.matmul %202, %203, %cst_75 {dimension_numbers = #tpu.dot_dimension_numbers<[1], [0], [0], [1], [0, 0, 1, 1], [], []>} : vector<8x8xf32>, vector<8x32xf32>, vector<8x32xf32> -> vector<8x32xf32>
    %205 = arith.addf %185, %204 : vector<8x32xf32>
    %206 = vector.extract_strided_slice %0 {offsets = [0, 1, 0], sizes = [8, 1, 32], strides = [1, 1, 1]} : vector<8x2x32xf32> to vector<8x1x32xf32>
    %207 = vector.shape_cast %206 : vector<8x1x32xf32> to vector<8x32xf32>
    %208 = arith.addf %207, %205 : vector<8x32xf32>
    %209 = vector.broadcast %6 : vector<1x32xf32> to vector<8x32xf32>
    %210 = arith.addf %208, %209 : vector<8x32xf32>
    %211 = vector.shape_cast %210 : vector<8x32xf32> to vector<8x1x32xf32>
    %c0_76 = arith.constant 0 : index
    %c1_77 = arith.constant 1 : index
    %c0_78 = arith.constant 0 : index
    %212 = vector.load %arg6[%c0_76, %c1_77, %c0_78] : memref<8x2x32xf32, #tpu.memory_space<vmem>>, vector<8x1x32xf32>
    tpu.vector_store %arg6[%c0_76, %c1_77, %c0_78], %211 {strides = array<i32>} : memref<8x2x32xf32, #tpu.memory_space<vmem>>, vector<8x1x32xf32>,
    %c0_79 = arith.constant 0 : index
    %c0_80 = arith.constant 0 : index
    %c0_81 = arith.constant 0 : index
    %213 = vector.load %arg6[%c0_79, %c0_80, %c0_81] : memref<8x2x32xf32, #tpu.memory_space<vmem>>, vector<8x2x32xf32>
    %214 = vector.shape_cast %213 : vector<8x2x32xf32> to vector<16x32xf32>
    %cst_82 = arith.constant dense<0.000000e+00> : vector<16xf32>
    %215 = vector.multi_reduction <add>, %214, %cst_82 [1] : vector<16x32xf32> to vector<16xf32>
    %216 = vector.shape_cast %215 : vector<16xf32> to vector<16x1xf32>
    %cst_83 = arith.constant 3.200000e+01 : f32
    %217 = vector.broadcast %cst_83 : f32 to vector<16x1xf32>
    %218 = arith.divf %216, %217 : vector<16x1xf32>
    %219 = vector.broadcast %218 : vector<16x1xf32> to vector<16x32xf32>
    %220 = arith.subf %214, %219 : vector<16x32xf32>
    %221 = arith.mulf %220, %220 : vector<16x32xf32>
    %cst_84 = arith.constant dense<0.000000e+00> : vector<16xf32>
    %222 = vector.multi_reduction <add>, %221, %cst_84 [1] : vector<16x32xf32> to vector<16xf32>
    %223 = vector.shape_cast %222 : vector<16xf32> to vector<16x1xf32>
    %cst_85 = arith.constant 3.200000e+01 : f32
    %224 = vector.broadcast %cst_85 : f32 to vector<16x1xf32>
    %225 = arith.divf %223, %224 : vector<16x1xf32>
    %226 = vector.broadcast %218 : vector<16x1xf32> to vector<16x32xf32>
    %227 = arith.subf %214, %226 : vector<16x32xf32>
    %cst_86 = arith.constant 9.99999974E-6 : f32
    %228 = vector.broadcast %cst_86 : f32 to vector<16x1xf32>
    %229 = arith.addf %225, %228 : vector<16x1xf32>
    %230 = math.rsqrt %229 : vector<16x1xf32>
    %231 = vector.broadcast %230 : vector<16x1xf32> to vector<16x32xf32>
    %232 = arith.mulf %227, %231 : vector<16x32xf32>
    %233 = vector.broadcast %3 : vector<1x32xf32> to vector<16x32xf32>
    %234 = arith.mulf %232, %233 : vector<16x32xf32>
    %235 = vector.broadcast %4 : vector<1x32xf32> to vector<16x32xf32>
    %236 = arith.addf %234, %235 : vector<16x32xf32>
    %c0_87 = arith.constant 0 : index
    %c0_88 = arith.constant 0 : index
    %237 = vector.load %arg3[%c0_87, %c0_88] : memref<32x64xf32, #tpu.memory_space<vmem>>, vector<32x64xf32>
    %cst_89 = arith.constant dense<0.000000e+00> : vector<16x64xf32>
    %238 = tpu.matmul %236, %237, %cst_89 {dimension_numbers = #tpu.dot_dimension_numbers<[1], [0], [0], [1], [0, 0, 1, 1], [], []>} : vector<16x32xf32>, vector<32x64xf32>, vector<16x64xf32> -> vector<16x64xf32>
    %239 = vector.broadcast %7 : vector<1x64xf32> to vector<16x64xf32>
    %240 = arith.addf %238, %239 : vector<16x64xf32>
    %cst_90 = arith.constant 5.000000e-01 : f32
    %241 = vector.broadcast %cst_90 : f32 to vector<16x64xf32>
    %242 = arith.mulf %241, %240 : vector<16x64xf32>
    %cst_91 = arith.constant 0.707106769 : f32
    %243 = vector.broadcast %cst_91 : f32 to vector<16x64xf32>
    %244 = arith.mulf %240, %243 : vector<16x64xf32>
    %245 = math.absf %244 : vector<16x64xf32>
    %cst_92 = arith.constant 0.327591091 : f32
    %246 = vector.broadcast %cst_92 : f32 to vector<16x64xf32>
    %247 = arith.mulf %246, %245 : vector<16x64xf32>
    %cst_93 = arith.constant 1.000000e+00 : f32
    %248 = vector.broadcast %cst_93 : f32 to vector<16x64xf32>
    %249 = arith.addf %248, %247 : vector<16x64xf32>
    %cst_94 = arith.constant 1.000000e+00 : f32
    %250 = vector.broadcast %cst_94 : f32 to vector<16x64xf32>
    %251 = arith.divf %250, %249 : vector<16x64xf32>
    %cst_95 = arith.constant 1.06140542 : f32
    %252 = vector.broadcast %cst_95 : f32 to vector<16x64xf32>
    %253 = arith.mulf %252, %251 : vector<16x64xf32>
    %cst_96 = arith.constant -1.45315206 : f32
    %254 = vector.broadcast %cst_96 : f32 to vector<16x64xf32>
    %255 = arith.addf %253, %254 : vector<16x64xf32>
    %256 = arith.mulf %255, %251 : vector<16x64xf32>
    %cst_97 = arith.constant 1.42141378 : f32
    %257 = vector.broadcast %cst_97 : f32 to vector<16x64xf32>
    %258 = arith.addf %256, %257 : vector<16x64xf32>
    %259 = arith.mulf %258, %251 : vector<16x64xf32>
    %cst_98 = arith.constant -0.284496725 : f32
    %260 = vector.broadcast %cst_98 : f32 to vector<16x64xf32>
    %261 = arith.addf %259, %260 : vector<16x64xf32>
    %262 = arith.mulf %261, %251 : vector<16x64xf32>
    %cst_99 = arith.constant 0.254829586 : f32
    %263 = vector.broadcast %cst_99 : f32 to vector<16x64xf32>
    %264 = arith.addf %262, %263 : vector<16x64xf32>
    %265 = arith.mulf %264, %251 : vector<16x64xf32>
    %cst_100 = arith.constant 0.000000e+00 : f32
    %266 = vector.broadcast %cst_100 : f32 to vector<16x64xf32>
    %267 = arith.subf %266, %245 : vector<16x64xf32>
    %268 = arith.mulf %267, %245 : vector<16x64xf32>
    %269 = math.exp %268 : vector<16x64xf32>
    %270 = arith.mulf %265, %269 : vector<16x64xf32>
    %cst_101 = arith.constant 1.000000e+00 : f32
    %271 = vector.broadcast %cst_101 : f32 to vector<16x64xf32>
    %272 = arith.subf %271, %270 : vector<16x64xf32>
    %cst_102 = arith.constant 0.000000e+00 : f32
    %273 = vector.broadcast %cst_102 : f32 to vector<16x64xf32>
    %274 = arith.cmpf oge, %244, %273 : vector<16x64xf32>
    %cst_103 = arith.constant 0.000000e+00 : f32
    %275 = vector.broadcast %cst_103 : f32 to vector<16x64xf32>
    %276 = arith.subf %275, %272 : vector<16x64xf32>
    %277 = arith.select %274, %272, %276 : vector<16x64xi1>, vector<16x64xf32>
    %cst_104 = arith.constant 1.000000e+00 : f32
    %278 = vector.broadcast %cst_104 : f32 to vector<16x64xf32>
    %279 = arith.addf %278, %277 : vector<16x64xf32>
    %280 = arith.mulf %242, %279 : vector<16x64xf32>
    %c0_105 = arith.constant 0 : index
    %c0_106 = arith.constant 0 : index
    %281 = vector.load %arg4[%c0_105, %c0_106] : memref<64x32xf32, #tpu.memory_space<vmem>>, vector<64x32xf32>
    %cst_107 = arith.constant dense<0.000000e+00> : vector<16x32xf32>
    %282 = tpu.matmul %280, %281, %cst_107 {dimension_numbers = #tpu.dot_dimension_numbers<[1], [0], [0], [1], [0, 0, 1, 1], [], []>} : vector<16x64xf32>, vector<64x32xf32>, vector<16x32xf32> -> vector<16x32xf32>
    %283 = vector.broadcast %8 : vector<1x32xf32> to vector<16x32xf32>
    %284 = arith.addf %282, %283 : vector<16x32xf32>
    %285 = arith.addf %214, %284 : vector<16x32xf32>
    %286 = vector.shape_cast %285 : vector<16x32xf32> to vector<8x2x32xf32>
    %c0_108 = arith.constant 0 : index
    %c0_109 = arith.constant 0 : index
    %c0_110 = arith.constant 0 : index
    %287 = vector.load %arg6[%c0_108, %c0_109, %c0_110] : memref<8x2x32xf32, #tpu.memory_space<vmem>>, vector<8x2x32xf32>
    tpu.vector_store %arg6[%c0_108, %c0_109, %c0_110], %286 {strides = array<i32>} : memref<8x2x32xf32, #tpu.memory_space<vmem>>, vector<8x2x32xf32>,
    return
  }
}

</mosaic_0001>

<bundles_post_ra>
// kernel: tpu_custom_call.1
= control target key start
LH: loop header
LB: loop body
LE: loop exit
PB: predicated region body
PF: predicated region fallthrough
CT: control target
= control target key end

     0   :  { %11 = vsyncpa [#allocation3], 0  ;;  %s2529_s0 = inlined_call_operand.hbm [shape: f32[8,2,32], index: 0, kind: input, shape index: {}]   ;;  %s2530_s1 = inlined_call_operand.vmem [shape: f32[32,96], index: 1, kind: input, shape index: {}]   ;;  %s2531_s2 = inlined_call_operand.vmem [shape: f32[32,32], index: 2, kind: input, shape index: {}]   ;;  %s2532_s3 = inlined_call_operand.vmem [shape: f32[32,64], index: 3, kind: input, shape index: {}]   ;;  %s2533_s4 = inlined_call_operand.vmem [shape: f32[64,32], index: 4, kind: input, shape index: {}]   ;;  %s2534_s5 = inlined_call_operand.hbm [shape: f32[8,96], index: 5, kind: input, shape index: {}]   ;;  %s2535_s6 = inlined_call_operand.hbm [shape: f32[8,2,32], index: 6, kind: output, shape index: {}]  }
   0x1   :  { %12 = vsyncpa [#allocation6], 0 }
   0x2   :  { %13 = vsyncpa [#allocation4], 0  ;;  %s18_s23 = sshll.u32 %s2529_s0, 4  ;;  %s1978_s24 = smov [#allocation2]   ;;  %s19_s23 = int_to_ptr.hbm [resolvable:$true] %s18_s23 }
   0x3   :  { %s20_s25 = sshll.u32 %s1978_s24, 4  ;;  %s40_s28 = sshll.u32 %s2534_s5, 4  ;;  %s21_s25 = int_to_ptr.vmem [resolvable:$true] %s20_s25  ;;  %s41_s28 = int_to_ptr.hbm [resolvable:$true] %s40_s28 }
   0x4   :  { %s1979_s29 = smov 32   ;;  %s1980_s30 = smov 2  }
   0x5   :  { %26 = dma.hbm_to_vmem [thread:$0]  %s19_s23, 256, %s21_s25, [#allocation3], %s1979_s29, %s1979_s29, %s1980_s30  }
   0x6   :  { %s1981_s7 = smov [#allocation5]  }
   0x7   :  { %s42_s8 = sshll.u32 %s1981_s7, 4  ;;  %s43_s8 = int_to_ptr.vmem [resolvable:$true] %s42_s8 }
   0x8   :  { %45 = dma.hbm_to_vmem [thread:$0]  %s41_s28, 128, %s43_s8, [#allocation6]  }
   0x9   :  { %1972 = dma.done.wait [#allocation3], 256  }
   0xa   :  { %1973 = vsyncadd [#allocation3], 4294967040 }
   0xb   :  { %1974 = dma.done.wait [#allocation6], 128  }
   0xc   :  { %1975 = vsyncadd [#allocation6], 4294967168  ;;  %v2043_v0 = vld [vmem:[#allocation2 + $0x8] sm:$0x3]  ;;  %v2045_v1 = vld [vmem:[#allocation2 + $0xa] sm:$0x3] }
   0xd   :  { %v2047_v2 = vld [vmem:[#allocation2 + $0xc] sm:$0x3]  ;;  %v2049_v3 = vld [vmem:[#allocation2 + $0xe] sm:$0x3]  ;;  %86 = vst [vmem:[#allocation1 + $0x20] ss:$4 sm:$0xff] %v2043_v0 }
   0xe   :  { %88 = vst [vmem:[#allocation1 + $0x21] ss:$4 sm:$0xff] %v2045_v1  ;;  %v2053_v4 = vld [vmem:[#allocation2] sm:$0x3]  ;;  %v2056_v5 = vld [vmem:[#allocation2 + $0x2] sm:$0x3] }
   0xf   :  { %90 = vst [vmem:[#allocation1 + $0x22] ss:$4 sm:$0xff] %v2047_v2  ;;  %v2058_v6 = vld [vmem:[#allocation2 + $0x4] sm:$0x3]  ;;  %v2061_v7 = vld [vmem:[#allocation2 + $0x6] sm:$0x3] }
  0x10   :  { %92 = vst [vmem:[#allocation1 + $0x23] ss:$4 sm:$0xff] %v2049_v3  ;;  %vm97_vm0 = vcmask 261120   ;;  %v1982_v12 = vmov 32.0   ;;  %v1983_v18 = vmov 269488144  }
  0x11   :  { %78 = vst [vmem:[#allocation1] ss:$4 sm:$0xff] %v2053_v4  ;;  %1850 = vrcp.f32 %v1982_v12  ;;  %v116_v19 = vunpack.c.l.s4 %v1983_v18  ;;  %v1984_v20 = vmov 842150450   ;;  %v1985_v22 = vmov 1414812756  }
  0x12   :  { %80 = vst [vmem:[#allocation1 + $0x1] ss:$4 sm:$0xff] %v2056_v5  ;;  %v120_v21 = vunpack.c.l.s4 %v1984_v20  ;;  %v124_v23 = vunpack.c.l.s4 %v1985_v22  ;;  %v1986_v24 = vmov 1987475062   ;;  %v311_v12 = vld [vmem:[%s2530_s1 + $0x8] sm:$0xff]  ;;  %vm383_vm8 = vcmask 1041409  }
  0x13   :  { %82 = vst [vmem:[#allocation1 + $0x2] ss:$4 sm:$0xff] %v2058_v6  ;;  %v128_v25 = vunpack.c.l.s4 %v1986_v24  ;;  %v2071_v27 = vunpack.c.0.s8 %v116_v19  ;;  %v1843_v24 = vld [vmem:[#allocation5 + $0x1] ss:$0 sm:$0xff]  ;;  %vm385_vm9 = vcmask 1042434   ;;  %vm387_vm10 = vcmask 1043459  }
  0x14   :  { %84 = vst [vmem:[#allocation1 + $0x3] ss:$4 sm:$0xff] %v2061_v7  ;;  %v2073_v28 = vunpack.c.0.s8 %v120_v21  ;;  %v2075_v29 = vunpack.c.0.s8 %v124_v23  ;;  %v1842_v21 = vld [vmem:[#allocation5] ss:$0 sm:$0xff]  ;;  %vm389_vm11 = vcmask 1044484   ;;  %vm391_vm12 = vcmask 1045509  }
  0x15   :  { %v2077_v30 = vunpack.c.0.s8 %v128_v25  ;;  %vm393_vm13 = vcmask 1046534   ;;  %vm395_vm14 = vcmask 1047559   ;;  %s1988_s15 = smov 96   ;;  %s1989_s16 = smov 64   ;;  %vm399_vm15 = vcmask 64512  }
  0x16   :  { %s1990_s17 = smov 88   ;;  %s1991_s18 = smov 80  }
  0x17   :  { %v94_v8 = vld.sshfl [vmem:[#allocation1 + $0x20] sm:$0xff pattern:$0x73625140]  ;;  %v1851_v13 = vpop.eup %1850  ;;  %s1992_s19 = smov 112   ;;  %s1993_s20 = smov 56  }
  0x18   :  { %v101_v9 = vsel %vm97_vm0, %v94_v8, 0.0  ;;  %v105_v14 = vmul.f32 32.0, %v1851_v13  ;;  %vm109_vm1 = vweird.f32 %v1851_v13  ;;  %s1994_s21 = smov 48   ;;  %s1995_s22 = smov 72  }
  0x19   :  { %102 = vadd.xlane.f32.xlu0 %v101_v9  ;;  %v313_v9 = vld [vmem:[%s2530_s1 + $0x18] sm:$0xff]  ;;  %s1996_s23 = smov 104   ;;  %s1997_s8 = smov 40  }
  0x1a   :  { %v106_v15 = vsub.f32 1.0, %v105_v14  ;;  %1817 = vmatpush.msra.mxu2 %v313_v9  ;;  %356 = vmatpush.msra.mxu0 %v313_v9  ;;  %v310_v14 = vld [vmem:[%s2530_s1] sm:$0xff] }
  0x1b   :  { %v93_v10 = vld.sshfl [vmem:[#allocation1] sm:$0xff pattern:$0x73625140] }
  0x1c   :  { %v98_v11 = vsel %vm97_vm0, %v93_v10, 0.0  ;;  %v107_v16 = vmul.f32 %v1851_v13, %v106_v15 }
  0x1e   :  { %v108_v17 = vadd.f32 %v1851_v13, %v107_v16 }
  0x20   :  { %v2069_v26 = vsel %vm109_vm1, %v1851_v13, %v108_v17 }
  0x21   :  { %99 = vadd.xlane.f32.xlu0 %v98_v11  ;;  %v312_v11 = vld [vmem:[%s2530_s1 + $0x10] sm:$0xff]  ;;  %s1987_s1 = smov 120  }
  0x22   :  { %1818 = vmatpush.msra.mxu2 %v312_v11  ;;  %357 = vmatpush.msra.mxu0 %v312_v11 }
  0x24   :  { %1819 = vmatpush.msra.mxu2 %v311_v12  ;;  %358 = vmatpush.msra.mxu0 %v311_v12 }
  0x26   :  { %1820 = vmatpush.msra.mxu2 %v310_v14  ;;  %359 = vmatpush.msra.mxu0 %v310_v14 }
  0x8c   :  { %v103_v31 = vpop.xlane.xlu0 %102 }
  0x8d   :  { %v112_v32 = vmul.f32 %v2069_v26, %v103_v31 }
  0x8f   :  { %v134_v33 = vperm.slane %v112_v32, %v2071_v27  ;;  %v138_v34 = vperm.slane %v112_v32, %v2073_v28  ;;  %v142_v35 = vperm.slane %v112_v32, %v2075_v29  ;;  %v146_v36 = vperm.slane %v112_v32, %v2077_v30 }
  0x90   :  { %v280_v32 = vrot.slane %v1842_v21, 2 }
  0x91   :  { %v2085_v37 = vsub.f32 %v2043_v0, %v134_v33  ;;  %v2088_v38 = vsub.f32 %v2045_v1, %v138_v34  ;;  %v2091_v39 = vsub.f32 %v2047_v2, %v142_v35  ;;  %v2094_v40 = vsub.f32 %v2049_v3, %v146_v36 }
  0x92   :  { %v281_v33 = vrot.slane %v1842_v21, 4  ;;  %v282_v34 = vrot.slane %v1842_v21, 6 }
  0x93   :  { %v167_v41 = vmul.f32 %v2085_v37, %v2085_v37  ;;  %v168_v42 = vmul.f32 %v2088_v38, %v2088_v38  ;;  %v169_v43 = vmul.f32 %v2091_v39, %v2091_v39  ;;  %v170_v44 = vmul.f32 %v2094_v40, %v2094_v40 }
  0x94   :  { %v100_v45 = vpop.xlane.xlu0 %99 }
  0x95   :  { %187 = vst [vmem:[#allocation1 + $0x20] ss:$4 sm:$0xff] %v167_v41  ;;  %v111_v46 = vmul.f32 %v2069_v26, %v100_v45  ;;  %v296_v45 = vrot.slane %v1843_v24, 2 }
  0x96   :  { %189 = vst [vmem:[#allocation1 + $0x21] ss:$4 sm:$0xff] %v168_v42 }
  0x97   :  { %191 = vst [vmem:[#allocation1 + $0x22] ss:$4 sm:$0xff] %v169_v43  ;;  %v118_v47 = vperm.slane %v111_v46, %v2071_v27  ;;  %v122_v48 = vperm.slane %v111_v46, %v2073_v28  ;;  %v126_v49 = vperm.slane %v111_v46, %v2075_v29  ;;  %v130_v50 = vperm.slane %v111_v46, %v2077_v30 }
  0x98   :  { %193 = vst [vmem:[#allocation1 + $0x23] ss:$4 sm:$0xff] %v170_v44  ;;  %v297_v46 = vrot.slane %v1843_v24, 4 }
  0x99   :  { %v2110_v51 = vsub.f32 %v2053_v4, %v118_v47  ;;  %v2113_v52 = vsub.f32 %v2056_v5, %v122_v48  ;;  %v2116_v53 = vsub.f32 %v2058_v6, %v126_v49  ;;  %v2119_v54 = vsub.f32 %v2061_v7, %v130_v50 }
  0x9b   :  { %v163_v55 = vmul.f32 %v2110_v51, %v2110_v51  ;;  %v164_v56 = vmul.f32 %v2113_v52, %v2113_v52  ;;  %v165_v57 = vmul.f32 %v2116_v53, %v2116_v53  ;;  %v166_v58 = vmul.f32 %v2119_v54, %v2119_v54 }
  0x9d   :  { %179 = vst [vmem:[#allocation1] ss:$4 sm:$0xff] %v163_v55 }
  0x9e   :  { %181 = vst [vmem:[#allocation1 + $0x1] ss:$4 sm:$0xff] %v164_v56  ;;  %v298_v56 = vrot.slane %v1843_v24, 6 }
  0x9f   :  { %v195_v59 = vld.sshfl [vmem:[#allocation1 + $0x20] sm:$0xff pattern:$0x73625140]  ;;  %183 = vst [vmem:[#allocation1 + $0x2] ss:$4 sm:$0xff] %v165_v57 }
  0xa0   :  { %185 = vst [vmem:[#allocation1 + $0x3] ss:$4 sm:$0xff] %v166_v58  ;;  %v201_v60 = vsel %vm97_vm0, %v195_v59, 0.0 }
  0xa1   :  { %202 = vadd.xlane.f32.xlu1 %v201_v60 }
  0xa7   :  { %v194_v61 = vld.sshfl [vmem:[#allocation1] sm:$0xff pattern:$0x73625140] }
  0xa8   :  { %v198_v62 = vsel %vm97_vm0, %v194_v61, 0.0 }
  0xa9   :  { %199 = vadd.xlane.f32.xlu1 %v198_v62 }
 0x114   :  { %v203_v63 = vpop.xlane.xlu1 %202 }
 0x115   :  { %v205_v8 = vmul.f32 %v203_v63, %v2069_v26 }
 0x117   :  { %v207_v10 = vadd.f32 1e-05, %v205_v8 }
 0x119   :  { %1852 = vrsqrt.f32 %v207_v10  ;;  %vm224_vm3 = vweird.f32 %v207_v10 }
 0x11c   :  { %v200_v13 = vpop.xlane.xlu1 %199 }
 0x11d   :  { %v204_v15 = vmul.f32 %v200_v13, %v2069_v26 }
 0x11f   :  { %v1853_v16 = vpop.eup %1852  ;;  %v206_v17 = vadd.f32 1e-05, %v204_v15 }
 0x120   :  { %v219_v18 = vmul.f32 %v1853_v16, %v207_v10  ;;  %vm225_vm2 = vweird.f32 %v1853_v16 }
 0x121   :  { %1854 = vrsqrt.f32 %v206_v17  ;;  %vm226_vm4 = vmor %vm224_vm3, %vm225_vm2  ;;  %vm214_vm6 = vweird.f32 %v206_v17 }
 0x122   :  { %v220_v19 = vmul.f32 %v1853_v16, %v219_v18 }
 0x124   :  { %v221_v20 = vmul.f32 0.5, %v220_v19 }
 0x126   :  { %v222_v22 = vsub.f32 1.5, %v221_v20 }
 0x127   :  { %v1855_v23 = vpop.eup %1854 }
 0x128   :  { %v223_v25 = vmul.f32 %v1853_v16, %v222_v22  ;;  %v209_v31 = vmul.f32 %v1855_v23, %v206_v17  ;;  %vm215_vm5 = vweird.f32 %v1855_v23 }
 0x129   :  { %vm216_vm7 = vmor %vm214_vm6, %vm215_vm5 }
 0x12a   :  { %v227_v35 = vsel %vm226_vm4, %v1853_v16, %v223_v25  ;;  %v210_v36 = vmul.f32 %v1855_v23, %v209_v31 }
 0x12b   :  { %v249_v41 = vperm.slane %v227_v35, %v2071_v27  ;;  %v253_v42 = vperm.slane %v227_v35, %v2073_v28  ;;  %v257_v43 = vperm.slane %v227_v35, %v2075_v29  ;;  %v261_v44 = vperm.slane %v227_v35, %v2077_v30 }
 0x12c   :  { %v211_v47 = vmul.f32 0.5, %v210_v36 }
 0x12d   :  { %v274_v48 = vmul.f32 %v249_v41, %v2085_v37  ;;  %v275_v49 = vmul.f32 %v253_v42, %v2088_v38  ;;  %v276_v50 = vmul.f32 %v257_v43, %v2091_v39  ;;  %v277_v55 = vmul.f32 %v261_v44, %v2094_v40 }
 0x12e   :  { %v212_v57 = vsub.f32 1.5, %v211_v47 }
 0x12f   :  { %v290_v58 = vmul.f32 %v1842_v21, %v274_v48  ;;  %v291_v59 = vmul.f32 %v280_v32, %v275_v49  ;;  %v292_v60 = vmul.f32 %v281_v33, %v276_v50  ;;  %v293_v61 = vmul.f32 %v282_v34, %v277_v55 }
 0x130   :  { %v213_v62 = vmul.f32 %v1855_v23, %v212_v57 }
 0x131   :  { %v306_v63 = vadd.f32 %v1843_v24, %v290_v58  ;;  %v307_v8 = vadd.f32 %v296_v45, %v291_v59  ;;  %v308_v9 = vadd.f32 %v297_v46, %v292_v60  ;;  %v309_v37 = vadd.f32 %v298_v56, %v293_v61 }
 0x132   :  { %v217_v10 = vsel %vm216_vm7, %v1855_v23, %v213_v62 }
 0x133   :  { %331 = vst [vmem:[#allocation1 + $0x20] ss:$4 sm:$0xff] %v306_v63  ;;  %v233_v38 = vperm.slane %v217_v10, %v2071_v27  ;;  %v237_v39 = vperm.slane %v217_v10, %v2073_v28  ;;  %v241_v40 = vperm.slane %v217_v10, %v2075_v29  ;;  %v245_v11 = vperm.slane %v217_v10, %v2077_v30 }
 0x134   :  { %333 = vst [vmem:[#allocation1 + $0x21] ss:$4 sm:$0xff] %v307_v8 }
 0x135   :  { %335 = vst [vmem:[#allocation1 + $0x22] ss:$4 sm:$0xff] %v308_v9  ;;  %v270_v12 = vmul.f32 %v233_v38, %v2110_v51  ;;  %v271_v13 = vmul.f32 %v237_v39, %v2113_v52  ;;  %v272_v14 = vmul.f32 %v241_v40, %v2116_v53  ;;  %v273_v15 = vmul.f32 %v245_v11, %v2119_v54  ;;  %v1844_v52 = vld [vmem:[#allocation5 + $0x4] ss:$0 sm:$0xff] }
 0x136   :  { %337 = vst [vmem:[#allocation1 + $0x23] ss:$4 sm:$0xff] %v309_v37 }
 0x137   :  { %v286_v16 = vmul.f32 %v1842_v21, %v270_v12  ;;  %v287_v17 = vmul.f32 %v280_v32, %v271_v13  ;;  %v288_v18 = vmul.f32 %v281_v33, %v272_v14  ;;  %v289_v19 = vmul.f32 %v282_v34, %v273_v15 }
 0x139   :  { %v302_v20 = vadd.f32 %v1843_v24, %v286_v16  ;;  %v303_v22 = vadd.f32 %v296_v45, %v287_v17  ;;  %v304_v23 = vadd.f32 %v297_v46, %v288_v18  ;;  %v305_v25 = vadd.f32 %v298_v56, %v289_v19 }
 0x13b   :  { %323 = vst [vmem:[#allocation1] ss:$4 sm:$0xff] %v302_v20 }
 0x13c   :  { %325 = vst [vmem:[#allocation1 + $0x1] ss:$4 sm:$0xff] %v303_v22 }
 0x13d   :  { %327 = vst [vmem:[#allocation1 + $0x2] ss:$4 sm:$0xff] %v304_v23  ;;  %v339_v31 = vld.sshfl [vmem:[#allocation1 + $0x20] sm:$0xff pattern:$0x73625140] }
 0x13e   :  { %329 = vst [vmem:[#allocation1 + $0x3] ss:$4 sm:$0xff] %v305_v25  ;;  %1780 = vmatmul.msk.f32.vlgmr.msra.gmra.mxu2 %vm97_vm0, %v339_v31 }
 0x145   :  { %v338_v51 = vld.sshfl [vmem:[#allocation1] sm:$0xff pattern:$0x73625140] }
 0x146   :  { %1779 = vmatmul.msk.f32.vlgmr.msra.gmra.mxu0 %vm97_vm0, %v338_v51 }
 0x1c1   :  { %v364_v53 = vpop.f32.mrf.mxu2 }
 0x1c2   :  { %v365_v21 = vadd.f32 %v1844_v52, %v364_v53 }
 0x1c3   :  { %v361_v54 = vpop.f32.mrf.mxu0 }
 0x1c4   :  { %v362_v32 = vadd.f32 %v1844_v52, %v361_v54  ;;  %v372_v34 = vrot.slane %v365_v21, 2  ;;  %v373_v46 = vrot.slane %v365_v21, 4  ;;  %v374_v47 = vrot.slane %v365_v21, 6 }
 0x1c5   :  { %v379_v56 = vperm.slane %v365_v21, 0  ;;  %v852_v57 = vperm.slane %v365_v21, 1 }
 0x1c6   :  { %v369_v24 = vrot.slane %v362_v32, 2  ;;  %v370_v33 = vrot.slane %v362_v32, 4  ;;  %v371_v35 = vrot.slane %v362_v32, 6  ;;  %v375_v36 = vperm.slane %v362_v32, 0 }
 0x1c7   :  { %v848_v41 = vperm.slane %v362_v32, 1  ;;  %v380_v60 = vperm.slane %v372_v34, 0  ;;  %v853_v61 = vperm.slane %v372_v34, 1  ;;  %v381_v8 = vperm.slane %v373_v46, 0 }
 0x1c8   :  { %v376_v42 = vperm.slane %v369_v24, 0  ;;  %v377_v43 = vperm.slane %v370_v33, 0  ;;  %v849_v44 = vperm.slane %v369_v24, 1  ;;  %v850_v45 = vperm.slane %v370_v33, 1 }
 0x1c9   :  { %v378_v48 = vperm.slane %v371_v35, 0  ;;  %v851_v50 = vperm.slane %v371_v35, 1  ;;  %v854_v9 = vperm.slane %v373_v46, 1  ;;  %v382_v38 = vperm.slane %v374_v47, 0 }
 0x1ca   :  { %v384_v49 = vsel %vm383_vm8, %v376_v42, %v375_v36  ;;  %v856_v55 = vsel %vm383_vm8, %v849_v44, %v848_v41  ;;  %v855_v39 = vperm.slane %v374_v47, 1 }
 0x1cb   :  { %v386_v58 = vsel %vm385_vm9, %v377_v43, %v384_v49  ;;  %v857_v59 = vsel %vm385_vm9, %v850_v45, %v856_v55  ;;  %v2214_v55 = vld [vmem:[%s2531_s2 + $0x8] sm:$0xff] }
 0x1cc   :  { %v388_v62 = vsel %vm387_vm10, %v378_v48, %v386_v58  ;;  %v858_v63 = vsel %vm387_vm10, %v851_v50, %v857_v59 }
 0x1cd   :  { %v390_v37 = vsel %vm389_vm11, %v379_v56, %v388_v62  ;;  %v859_v10 = vsel %vm389_vm11, %v852_v57, %v858_v63 }
 0x1ce   :  { %v392_v40 = vsel %vm391_vm12, %v380_v60, %v390_v37  ;;  %v860_v11 = vsel %vm391_vm12, %v853_v61, %v859_v10 }
 0x1cf   :  { %v394_v12 = vsel %vm393_vm13, %v381_v8, %v392_v40  ;;  %v861_v13 = vsel %vm393_vm13, %v854_v9, %v860_v11 }
 0x1d0   :  { %v2176_v14 = vsel %vm395_vm14, %v382_v38, %v394_v12  ;;  %v2179_v15 = vsel %vm395_vm14, %v855_v39, %v861_v13  ;;  %v474_v12 = vld [vmem:[%s2531_s2] sm:$0xff] }
 0x1d1   :  { %475 = vrot.lane.b32.xlu0 %v2176_v14, %s1987_s1  ;;  %397 = vrot.lane.b32.xlu2 %v2176_v14, %s1988_s15 }
 0x1d9   :  { %448 = vrot.lane.b32.xlu0 %v2176_v14, %s1989_s16  ;;  %477 = vrot.lane.b32.xlu2 %v2176_v14, %s1990_s17 }
 0x1e1   :  { %602 = vrot.lane.b32.xlu0 %v2176_v14, %s1991_s18 }
 0x1e9   :  { %600 = vrot.lane.b32.xlu0 %v2176_v14, %s1992_s19 }
 0x22b   :  { %v398_v16 = vpop.permute.xlu2 %397 }
 0x22c   :  { %1781 = vmatpush.xpose.msk.msra.mxu1 %vm399_vm15, %v398_v16 }
 0x22f   :  { %1782 = vmatmul.msk.f32.vlgmr.msra.gmra.mxu1 %vm399_vm15, %v2176_v14 }
 0x230   :  { %572 = vmatpush.msrb.mxu1 %v2214_v55 }
 0x233   :  { %v478_v17 = vpop.permute.xlu2 %477 }
 0x234   :  { %1784 = vmatpush.xpose.msk.msra.mxu3 %vm399_vm15, %v478_v17 }
 0x238   :  { %595 = vmatpush.msrb.mxu3 %v474_v12 }
 0x243   :  { %v476_v18 = vpop.permute.xlu0 %475 }
 0x244   :  { %1785 = vmatmul.msk.f32.vlgmr.msra.gmra.mxu3 %vm399_vm15, %v476_v18 }
 0x24b   :  { %v449_v19 = vpop.permute.xlu0 %448 }
 0x24c   :  { %469 = vmatpush.msrb.mxu2 %v449_v19 }
 0x253   :  { %v603_v10 = vpop.permute.xlu0 %602 }
 0x25b   :  { %v601_v11 = vpop.permute.xlu0 %600 }
 0x2ac   :  { %v421_v20 = vpop.f32.mrf.mxu1 }
 0x2ad   :  { %v424_v22 = vsel %vm399_vm15, %v421_v20, -inf }
 0x2ae   :  { %425 = vmax.xlane.f32.xlu1 %v424_v22 }
 0x2c7   :  { %v500_v23 = vpop.f32.mrf.mxu3 }
 0x2c8   :  { %v503_v25 = vsel %vm399_vm15, %v500_v23, -inf }
 0x2c9   :  { %504 = vmax.xlane.f32.xlu2 %v503_v25 }
 0x321   :  { %v426_v31 = vpop.xlane.xlu1 %425 }
 0x322   :  { %v427_v51 = vsub.f32 %v421_v20, %v426_v31  ;;  %v678_v20 = vld [vmem:[%s2531_s2 + $0x10] sm:$0xff] }
 0x323   :  { %697 = vmatpush.msra.mxu3 %v678_v20 }
 0x324   :  { %v428_v52 = vmul.f32 1.442695, %v427_v51 }
 0x326   :  { %1856 = vpow2.f32 %v428_v52 }
 0x32c   :  { %v1857_v53 = vpop.eup %1856 }
 0x32d   :  { %v430_v54 = vsel %vm399_vm15, %v1857_v53, 0.0 }
 0x32e   :  { %431 = vadd.xlane.f32.xlu1 %v430_v54 }
 0x33c   :  { %v505_v21 = vpop.xlane.xlu2 %504 }
 0x33d   :  { %v506_v32 = vsub.f32 %v500_v23, %v505_v21 }
 0x33f   :  { %v507_v24 = vmul.f32 1.442695, %v506_v32 }
 0x341   :  { %1858 = vpow2.f32 %v507_v24 }
 0x347   :  { %v1859_v33 = vpop.eup %1858 }
 0x348   :  { %v509_v34 = vsel %vm399_vm15, %v1859_v33, 0.0 }
 0x349   :  { %510 = vadd.xlane.f32.xlu1 %v509_v34 }
 0x362   :  { %527 = vrot.lane.b32.xlu1 %v2176_v14, %s1993_s20 }
 0x36a   :  { %652 = vrot.lane.b32.xlu1 %v2176_v14, %s1994_s21 }
 0x372   :  { %705 = vrot.lane.b32.xlu1 %v2176_v14, %s1995_s22 }
 0x37a   :  { %703 = vrot.lane.b32.xlu1 %v2176_v14, %s1996_s23 }
 0x3a1   :  { %v432_v35 = vpop.xlane.xlu1 %431 }
 0x3a2   :  { %1860 = vrcp.f32 %v432_v35  ;;  %v444_v43 = vand.u32 2147483648, %v432_v35  ;;  %v442_v45 = vand.u32 2147483647, %v432_v35  ;;  %vm438_vm2 = vweird.f32 %v432_v35 }
 0x3a4   :  { %v445_v47 = vor.u32 1.1754944e-38, %v444_v43  ;;  %vm443_vm4 = vcmp.eq.f32.partialorder %v442_v45, 8.507059e+37 }
 0x3a8   :  { %v1861_v36 = vpop.eup %1860 }
 0x3a9   :  { %v434_v41 = vmul.f32 %v1861_v36, %v432_v35  ;;  %vm439_vm1 = vweird.f32 %v1861_v36 }
 0x3aa   :  { %vm440_vm3 = vmor %vm438_vm2, %vm439_vm1 }
 0x3ab   :  { %v435_v42 = vsub.f32 1.0, %v434_v41 }
 0x3ad   :  { %v436_v44 = vmul.f32 %v1861_v36, %v435_v42 }
 0x3af   :  { %v437_v46 = vadd.f32 %v1861_v36, %v436_v44 }
 0x3b1   :  { %v441_v48 = vsel %vm440_vm3, %v1861_v36, %v437_v46 }
 0x3b2   :  { %v446_v49 = vsel %vm443_vm4, %v445_v47, %v441_v48 }
 0x3b3   :  { %v447_v50 = vmul.f32 %v1857_v53, %v446_v49 }
 0x3b5   :  { %1783 = vmatmul.msk.f32.vlgmr.msrb.gmra.mxu2 %vm399_vm15, %v447_v50 }
 0x3bc   :  { %v511_v56 = vpop.xlane.xlu1 %510 }
 0x3bd   :  { %1862 = vrcp.f32 %v511_v56  ;;  %v523_v62 = vand.u32 2147483648, %v511_v56  ;;  %vm517_vm6 = vweird.f32 %v511_v56  ;;  %v521_v63 = vand.u32 2147483647, %v511_v56 }
 0x3bf   :  { %v524_v9 = vor.u32 1.1754944e-38, %v523_v62  ;;  %vm522_vm8 = vcmp.eq.f32.partialorder %v521_v63, 8.507059e+37 }
 0x3c3   :  { %v1863_v57 = vpop.eup %1862 }
 0x3c4   :  { %v513_v58 = vmul.f32 %v1863_v57, %v511_v56  ;;  %vm518_vm5 = vweird.f32 %v1863_v57 }
 0x3c5   :  { %vm519_vm7 = vmor %vm517_vm6, %vm518_vm5 }
 0x3c6   :  { %v514_v59 = vsub.f32 1.0, %v513_v58 }
 0x3c8   :  { %v515_v60 = vmul.f32 %v1863_v57, %v514_v59 }
 0x3ca   :  { %v516_v61 = vadd.f32 %v1863_v57, %v515_v60 }
 0x3cc   :  { %v520_v8 = vsel %vm519_vm7, %v1863_v57, %v516_v61  ;;  %vm839_vm7 = vcmask 253952  }
 0x3cd   :  { %v525_v37 = vsel %vm522_vm8, %v524_v9, %v520_v8 }
 0x3ce   :  { %v526_v39 = vmul.f32 %v1859_v33, %v525_v37 }
 0x3d4   :  { %v528_v38 = vpop.permute.xlu1 %527 }
 0x3d5   :  { %548 = vmatpush.msra.mxu2 %v528_v38 }
 0x3d6   :  { %1786 = vmatmul.msk.f32.vlgmr.msra.gmra.mxu2 %vm399_vm15, %v526_v39 }
 0x3d7   :  { %1789 = vmatpush.xpose.msk.msrb.mxu2 %vm399_vm15, %v603_v10 }
 0x3dc   :  { %v653_v40 = vpop.permute.xlu1 %652 }
 0x3dd   :  { %673 = vmatpush.msra.mxu1 %v653_v40 }
 0x3de   :  { %1790 = vmatmul.msk.f32.vlgmr.msrb.gmra.mxu2 %vm399_vm15, %v601_v11 }
 0x3e4   :  { %v706_v17 = vpop.permute.xlu1 %705 }
 0x3ec   :  { %v704_v45 = vpop.permute.xlu1 %703 }
 0x438   :  { %v471_v13 = vpop.f32.mrf.mxu2 }
 0x439   :  { %1788 = vmatmul.msk.f32.vlgmr.msrb.gmra.mxu3 %vm399_vm15, %v471_v13 }
 0x459   :  { %v550_v16 = vpop.f32.mrf.mxu2 }
 0x45a   :  { %1787 = vmatmul.msk.f32.vlgmr.msrb.gmra.mxu1 %vm399_vm15, %v550_v16 }
 0x45b   :  { %1793 = vmatpush.xpose.msk.msrb.mxu1 %vm399_vm15, %v706_v17 }
 0x461   :  { %v625_v18 = vpop.f32.mrf.mxu2 }
 0x462   :  { %v628_v19 = vsel %vm399_vm15, %v625_v18, -inf }
 0x463   :  { %629 = vmax.xlane.f32.xlu2 %v628_v19 }
 0x47b   :  { %863 = vrot.lane.b32.xlu2 %v2179_v15, %s1988_s15 }
 0x4bc   :  { %v2247_v50 = vpop.f32.mrf.mxu3 }
 0x4d6   :  { %v630_v22 = vpop.xlane.xlu2 %629 }
 0x4d7   :  { %v631_v23 = vsub.f32 %v625_v18, %v630_v22  ;;  %v2238_v46 = vpop.f32.mrf.mxu1 }
 0x4d9   :  { %v632_v25 = vmul.f32 1.442695, %v631_v23 }
 0x4db   :  { %1864 = vpow2.f32 %v632_v25 }
 0x4de   :  { %v864_v31 = vpop.permute.xlu2 %863 }
 0x4df   :  { %1797 = vmatpush.xpose.msk.msrb.mxu3 %vm399_vm15, %v864_v31 }
 0x4e1   :  { %v1865_v51 = vpop.eup %1864 }
 0x4e2   :  { %v634_v52 = vsel %vm399_vm15, %v1865_v51, 0.0 }
 0x4e3   :  { %635 = vadd.xlane.f32.xlu0 %v634_v52 }
 0x4f7   :  { %913 = vrot.lane.b32.xlu0 %v2179_v15, %s1989_s16 }
 0x556   :  { %v636_v53 = vpop.xlane.xlu0 %635 }
 0x557   :  { %1866 = vrcp.f32 %v636_v53  ;;  %v648_v24 = vand.u32 2147483648, %v636_v53  ;;  %v646_v34 = vand.u32 2147483647, %v636_v53  ;;  %vm642_vm10 = vweird.f32 %v636_v53 }
 0x559   :  { %v649_v36 = vor.u32 1.1754944e-38, %v648_v24  ;;  %vm647_vm12 = vcmp.eq.f32.partialorder %v646_v34, 8.507059e+37 }
 0x55d   :  { %v1867_v54 = vpop.eup %1866 }
 0x55e   :  { %v638_v21 = vmul.f32 %v1867_v54, %v636_v53  ;;  %vm643_vm9 = vweird.f32 %v1867_v54 }
 0x55f   :  { %vm644_vm11 = vmor %vm642_vm10, %vm643_vm9 }
 0x560   :  { %v639_v32 = vsub.f32 1.0, %v638_v21 }
 0x562   :  { %v640_v33 = vmul.f32 %v1867_v54, %v639_v32 }
 0x564   :  { %v641_v35 = vadd.f32 %v1867_v54, %v640_v33 }
 0x566   :  { %v645_v41 = vsel %vm644_vm11, %v1867_v54, %v641_v35 }
 0x567   :  { %v650_v42 = vsel %vm647_vm12, %v649_v36, %v645_v41 }
 0x568   :  { %v651_v43 = vmul.f32 %v1865_v51, %v650_v42 }
 0x569   :  { %v914_v44 = vpop.permute.xlu0 %913 }
 0x56a   :  { %1791 = vmatmul.msk.f32.vlgmr.msra.gmra.mxu1 %vm399_vm15, %v651_v43  ;;  %934 = vmatpush.msrb.mxu0 %v914_v44  ;;  %v2276_v44 = vld [vmem:[%s2531_s2 + $0x18] sm:$0xff]  ;;  %s1765_s2 = sshll.u32 %s2535_s6, 4  ;;  %s1766_s2 = int_to_ptr.hbm [resolvable:$true] %s1765_s2 }
 0x56b   :  { %800 = vmatpush.msra.mxu1 %v2276_v44 }
 0x56c   :  { %1060 = vmatpush.msra.mxu0 %v474_v12 }
 0x572   :  { %1794 = vmatmul.msk.f32.vlgmr.msrb.gmra.mxu1 %vm399_vm15, %v704_v45 }
 0x5e7   :  { %v675_v47 = vpop.f32.mrf.mxu1 }
 0x5e8   :  { %1792 = vmatmul.msk.f32.vlgmr.msra.gmra.mxu3 %vm399_vm15, %v675_v47 }
 0x5e9   :  { %1037 = vmatpush.msra.mxu3 %v2214_v55 }
 0x5ef   :  { %v728_v48 = vpop.f32.mrf.mxu1 }
 0x5f0   :  { %1798 = vmatmul.msk.f32.vlgmr.msrb.gmra.mxu3 %vm399_vm15, %v2179_v15  ;;  %v731_v49 = vsel %vm399_vm15, %v728_v48, -inf }
 0x5f1   :  { %732 = vmax.xlane.f32.xlu0 %v731_v49  ;;  %1162 = vmatpush.msrb.mxu3 %v678_v20 }
 0x605   :  { %1065 = vrot.lane.b32.xlu0 %v2179_v15, %s1992_s19 }
 0x664   :  { %v733_v55 = vpop.xlane.xlu0 %732 }
 0x665   :  { %v734_v61 = vsub.f32 %v728_v48, %v733_v55 }
 0x667   :  { %v735_v63 = vmul.f32 1.442695, %v734_v61 }
 0x66b   :  { %v2249_v56 = vpop.f32.mrf.mxu3 }
 0x673   :  { %v886_v57 = vpop.f32.mrf.mxu3 }
 0x674   :  { %v889_v58 = vsel %vm399_vm15, %v886_v57, -inf }
 0x675   :  { %890 = vmax.xlane.f32.xlu1 %v889_v58 }
 0x677   :  { %v1066_v43 = vpop.permute.xlu0 %1065 }
 0x68e   :  { %755 = vrot.lane.b32.xlu1 %v2176_v14, %s1997_s8 }
 0x696   :  { %940 = vrot.lane.b32.xlu1 %v2179_v15, %s1987_s1 }
 0x69e   :  { %1170 = vrot.lane.b32.xlu1 %v2179_v15, %s1995_s22 }
 0x6e8   :  { %v891_v59 = vpop.xlane.xlu1 %890 }
 0x6e9   :  { %v892_v60 = vsub.f32 %v886_v57, %v891_v59 }
 0x6eb   :  { %v893_v62 = vmul.f32 1.442695, %v892_v60 }
 0x6ed   :  { %1868 = vpow2.f32 %v893_v62  ;;  %v598_v62 = vadd.f32 %v2247_v50, %v2238_v46 }
 0x6ee   :  { %1870 = vpow2.f32 %v735_v63 }
 0x6ef   :  { %v702_v63 = vadd.f32 %v2249_v56, %v598_v62 }
 0x6f3   :  { %v1869_v8 = vpop.eup %1868 }
 0x6f4   :  { %v895_v9 = vsel %vm399_vm15, %v1869_v8, 0.0  ;;  %v1871_v37 = vpop.eup %1870 }
 0x6f5   :  { %896 = vadd.xlane.f32.xlu2 %v895_v9  ;;  %v737_v14 = vsel %vm399_vm15, %v1871_v37, 0.0 }
 0x6fd   :  { %738 = vadd.xlane.f32.xlu2 %v737_v14 }
 0x700   :  { %v756_v10 = vpop.permute.xlu1 %755 }
 0x701   :  { %776 = vmatpush.msra.mxu2 %v756_v10 }
 0x708   :  { %v941_v12 = vpop.permute.xlu1 %940 }
 0x710   :  { %v1171_v21 = vpop.permute.xlu1 %1170 }
 0x715   :  { %942 = vrot.lane.b32.xlu2 %v2179_v15, %s1990_s17 }
 0x71d   :  { %1067 = vrot.lane.b32.xlu2 %v2179_v15, %s1991_s18 }
 0x725   :  { %1168 = vrot.lane.b32.xlu2 %v2179_v15, %s1996_s23 }
 0x768   :  { %v897_v38 = vpop.xlane.xlu2 %896 }
 0x769   :  { %1872 = vrcp.f32 %v897_v38  ;;  %v909_v16 = vand.u32 2147483648, %v897_v38  ;;  %v907_v18 = vand.u32 2147483647, %v897_v38  ;;  %vm903_vm14 = vweird.f32 %v897_v38 }
 0x76b   :  { %v910_v22 = vor.u32 1.1754944e-38, %v909_v16  ;;  %vm908_vm2 = vcmp.eq.f32.partialorder %v907_v18, 8.507059e+37 }
 0x76f   :  { %v1873_v39 = vpop.eup %1872 }
 0x770   :  { %v899_v40 = vmul.f32 %v1873_v39, %v897_v38  ;;  %v739_v11 = vpop.xlane.xlu2 %738  ;;  %vm904_vm13 = vweird.f32 %v1873_v39 }
 0x771   :  { %1874 = vrcp.f32 %v739_v11  ;;  %vm905_vm1 = vmor %vm903_vm14, %vm904_vm13  ;;  %v751_v54 = vand.u32 2147483648, %v739_v11  ;;  %v749_v24 = vand.u32 2147483647, %v739_v11  ;;  %vm745_vm4 = vweird.f32 %v739_v11 }
 0x772   :  { %v900_v13 = vsub.f32 1.0, %v899_v40 }
 0x773   :  { %v752_v34 = vor.u32 1.1754944e-38, %v751_v54  ;;  %vm750_vm6 = vcmp.eq.f32.partialorder %v749_v24, 8.507059e+37 }
 0x774   :  { %v901_v17 = vmul.f32 %v1873_v39, %v900_v13 }
 0x776   :  { %v902_v19 = vadd.f32 %v1873_v39, %v901_v17 }
 0x777   :  { %v1875_v20 = vpop.eup %1874 }
 0x778   :  { %v741_v23 = vmul.f32 %v1875_v20, %v739_v11  ;;  %v943_v25 = vpop.permute.xlu2 %942  ;;  %v906_v31 = vsel %vm905_vm1, %v1873_v39, %v902_v19  ;;  %vm746_vm3 = vweird.f32 %v1875_v20 }
 0x779   :  { %1800 = vmatpush.xpose.msk.msrb.mxu2 %vm399_vm15, %v943_v25  ;;  %v911_v51 = vsel %vm908_vm2, %v910_v22, %v906_v31  ;;  %vm747_vm5 = vmor %vm745_vm4, %vm746_vm3 }
 0x77a   :  { %v742_v52 = vsub.f32 1.0, %v741_v23  ;;  %v912_v53 = vmul.f32 %v1869_v8, %v911_v51 }
 0x77c   :  { %v743_v32 = vmul.f32 %v1875_v20, %v742_v52  ;;  %1799 = vmatmul.msk.f32.vlgmr.msrb.gmra.mxu0 %vm399_vm15, %v912_v53 }
 0x77d   :  { %1809 = vmatpush.xpose.msk.msrb.mxu0 %vm399_vm15, %v1171_v21 }
 0x77e   :  { %v744_v33 = vadd.f32 %v1875_v20, %v743_v32 }
 0x780   :  { %v748_v35 = vsel %vm747_vm5, %v1875_v20, %v744_v33  ;;  %v1068_v42 = vpop.permute.xlu2 %1067 }
 0x781   :  { %v753_v36 = vsel %vm750_vm6, %v752_v34, %v748_v35  ;;  %vm1303_vm6 = vcmask 254977  }
 0x782   :  { %v754_v41 = vmul.f32 %v1871_v37, %v753_v36 }
 0x784   :  { %1795 = vmatmul.msk.f32.vlgmr.msra.gmra.mxu2 %vm399_vm15, %v754_v41 }
 0x785   :  { %1805 = vmatpush.xpose.msk.msra.mxu2 %vm399_vm15, %v1068_v42 }
 0x788   :  { %v1169_v47 = vpop.permute.xlu2 %1168 }
 0x78c   :  { %1801 = vmatmul.msk.f32.vlgmr.msrb.gmra.mxu2 %vm399_vm15, %v941_v12  ;;  %v2290_v12 = vld [vmem:[#allocation5 + $0x5] ss:$0 sm:$0xff] }
 0x794   :  { %1806 = vmatmul.msk.f32.vlgmr.msra.gmra.mxu2 %vm399_vm15, %v1066_v43 }
 0x7f9   :  { %v936_v45 = vpop.f32.mrf.mxu0 }
 0x7fa   :  { %1804 = vmatmul.msk.f32.vlgmr.msra.gmra.mxu0 %vm399_vm15, %v936_v45 }
 0x802   :  { %1810 = vmatmul.msk.f32.vlgmr.msrb.gmra.mxu0 %vm399_vm15, %v1169_v47 }
 0x807   :  { %v778_v48 = vpop.f32.mrf.mxu2 }
 0x808   :  { %1796 = vmatmul.msk.f32.vlgmr.msra.gmra.mxu1 %vm399_vm15, %v778_v48 }
 0x80f   :  { %v965_v49 = vpop.f32.mrf.mxu2 }
 0x810   :  { %v968_v57 = vsel %vm399_vm15, %v965_v49, -inf }
 0x811   :  { %969 = vmax.xlane.f32.xlu1 %v968_v57 }
 0x817   :  { %v1090_v58 = vpop.f32.mrf.mxu2 }
 0x818   :  { %v1093_v55 = vsel %vm399_vm15, %v1090_v58, -inf }
 0x819   :  { %1094 = vmax.xlane.f32.xlu2 %v1093_v55 }
 0x877   :  { %v2284_v59 = vpop.f32.mrf.mxu0 }
 0x87f   :  { %v1193_v60 = vpop.f32.mrf.mxu0 }
 0x880   :  { %v1196_v61 = vsel %vm399_vm15, %v1193_v60, -inf }
 0x881   :  { %1197 = vmax.xlane.f32.xlu0 %v1196_v61 }
 0x884   :  { %v970_v8 = vpop.xlane.xlu1 %969 }
 0x885   :  { %v971_v9 = vsub.f32 %v965_v49, %v970_v8  ;;  %v802_v37 = vpop.f32.mrf.mxu1 }
 0x886   :  { %v805_v14 = vadd.f32 %v802_v37, %v702_v63 }
 0x887   :  { %v972_v10 = vmul.f32 1.442695, %v971_v9 }
 0x888   :  { %v807_v38 = vrot.slane %v805_v14, 1  ;;  %v808_v39 = vrot.slane %v805_v14, 2  ;;  %v809_v40 = vrot.slane %v805_v14, 3  ;;  %v810_v11 = vrot.slane %v805_v14, 4 }
 0x889   :  { %1876 = vpow2.f32 %v972_v10  ;;  %v811_v13 = vrot.slane %v805_v14, 5  ;;  %v812_v16 = vrot.slane %v805_v14, 6  ;;  %v813_v17 = vrot.slane %v805_v14, 7 }
 0x88a   :  { %v822_v18 = vadd.f32 %v805_v14, %v2053_v4  ;;  %v823_v46 = vadd.f32 %v807_v38, %v2056_v5  ;;  %v824_v50 = vadd.f32 %v808_v39, %v2058_v6  ;;  %v825_v56 = vadd.f32 %v809_v40, %v2061_v7 }
 0x88b   :  { %v826_v19 = vadd.f32 %v810_v11, %v2043_v0  ;;  %v827_v20 = vadd.f32 %v811_v13, %v2045_v1  ;;  %v828_v22 = vadd.f32 %v812_v16, %v2047_v2  ;;  %v829_v52 = vadd.f32 %v813_v17, %v2049_v3 }
 0x88c   :  { %v831_v23 = vadd.f32 %v2290_v12, %v822_v18  ;;  %v832_v25 = vadd.f32 %v2290_v12, %v823_v46  ;;  %v833_v31 = vadd.f32 %v2290_v12, %v824_v50  ;;  %v1095_v51 = vpop.xlane.xlu2 %1094  ;;  %v834_v53 = vadd.f32 %v2290_v12, %v825_v56 }
 0x88d   :  { %v835_v54 = vadd.f32 %v2290_v12, %v826_v19  ;;  %v1096_v21 = vsub.f32 %v1090_v58, %v1095_v51  ;;  %v836_v24 = vadd.f32 %v2290_v12, %v827_v20  ;;  %v837_v33 = vadd.f32 %v2290_v12, %v828_v22 }
 0x88e   :  { %840 = vst.msk [vmem:[#allocation7] sm:$0x1] %vm839_vm7, %v831_v23  ;;  %v838_v36 = vadd.f32 %v2290_v12, %v829_v52 }
 0x88f   :  { %v1877_v32 = vpop.eup %1876  ;;  %841 = vst.msk [vmem:[#allocation7 + $0x2] sm:$0x1] %vm839_vm7, %v832_v25  ;;  %v1097_v34 = vmul.f32 1.442695, %v1096_v21 }
 0x890   :  { %842 = vst.msk [vmem:[#allocation7 + $0x4] sm:$0x1] %vm839_vm7, %v833_v31  ;;  %v974_v35 = vsel %vm399_vm15, %v1877_v32, 0.0 }
 0x891   :  { %843 = vst.msk [vmem:[#allocation7 + $0x6] sm:$0x1] %vm839_vm7, %v834_v53  ;;  %975 = vadd.xlane.f32.xlu1 %v974_v35  ;;  %1878 = vpow2.f32 %v1097_v34 }
 0x892   :  { %844 = vst.msk [vmem:[#allocation7 + $0x8] sm:$0x1] %vm839_vm7, %v835_v54 }
 0x893   :  { %845 = vst.msk [vmem:[#allocation7 + $0xa] sm:$0x1] %vm839_vm7, %v836_v24 }
 0x894   :  { %846 = vst.msk [vmem:[#allocation7 + $0xc] sm:$0x1] %vm839_vm7, %v837_v33 }
 0x895   :  { %847 = vst.msk [vmem:[#allocation7 + $0xe] sm:$0x1] %vm839_vm7, %v838_v36  ;;  %992 = vrot.lane.b32.xlu0 %v2179_v15, %s1993_s20 }
 0x897   :  { %v1879_v41 = vpop.eup %1878 }
 0x898   :  { %v1099_v42 = vsel %vm399_vm15, %v1879_v41, 0.0 }
 0x899   :  { %1100 = vadd.xlane.f32.xlu2 %v1099_v42 }
 0x8b1   :  { %1117 = vrot.lane.b32.xlu2 %v2179_v15, %s1994_s21 }
 0x8f4   :  { %v1198_v43 = vpop.xlane.xlu0 %1197 }
 0x8f5   :  { %v1199_v45 = vsub.f32 %v1193_v60, %v1198_v43 }
 0x8f7   :  { %v1200_v47 = vmul.f32 1.442695, %v1199_v45 }
 0x8f9   :  { %1880 = vpow2.f32 %v1200_v47 }
 0x8ff   :  { %v1881_v48 = vpop.eup %1880 }
 0x900   :  { %v1202_v49 = vsel %vm399_vm15, %v1881_v48, 0.0 }
 0x901   :  { %1203 = vadd.xlane.f32.xlu1 %v1202_v49 }
 0x904   :  { %v976_v57 = vpop.xlane.xlu1 %975 }
 0x905   :  { %1882 = vrcp.f32 %v976_v57  ;;  %v988_v8 = vand.u32 2147483648, %v976_v57  ;;  %v986_v37 = vand.u32 2147483647, %v976_v57  ;;  %vm982_vm9 = vweird.f32 %v976_v57 }
 0x907   :  { %v993_v58 = vpop.permute.xlu0 %992  ;;  %v989_v14 = vor.u32 1.1754944e-38, %v988_v8  ;;  %vm987_vm11 = vcmp.eq.f32.partialorder %v986_v37, 8.507059e+37 }
 0x908   :  { %1013 = vmatpush.msrb.mxu1 %v993_v58 }
 0x90b   :  { %v1883_v55 = vpop.eup %1882 }
 0x90c   :  { %v978_v61 = vmul.f32 %v1883_v55, %v976_v57  ;;  %v1101_v62 = vpop.xlane.xlu2 %1100  ;;  %vm983_vm8 = vweird.f32 %v1883_v55 }
 0x90d   :  { %1884 = vrcp.f32 %v1101_v62  ;;  %vm984_vm10 = vmor %vm982_vm9, %vm983_vm8  ;;  %v1113_v17 = vand.u32 2147483648, %v1101_v62  ;;  %v1111_v46 = vand.u32 2147483647, %v1101_v62  ;;  %vm1107_vm13 = vweird.f32 %v1101_v62 }
 0x90e   :  { %v979_v63 = vsub.f32 1.0, %v978_v61 }
 0x90f   :  { %v1114_v56 = vor.u32 1.1754944e-38, %v1113_v17  ;;  %vm1112_vm1 = vcmp.eq.f32.partialorder %v1111_v46, 8.507059e+37 }
 0x910   :  { %v980_v9 = vmul.f32 %v1883_v55, %v979_v63 }
 0x912   :  { %v981_v60 = vadd.f32 %v1883_v55, %v980_v9 }
 0x913   :  { %v1885_v10 = vpop.eup %1884 }
 0x914   :  { %v985_v38 = vsel %vm984_vm10, %v1883_v55, %v981_v60  ;;  %v1103_v40 = vmul.f32 %v1885_v10, %v1101_v62  ;;  %v1118_v11 = vpop.permute.xlu2 %1117  ;;  %vm1108_vm12 = vweird.f32 %v1885_v10 }
 0x915   :  { %v990_v39 = vsel %vm987_vm11, %v989_v14, %v985_v38  ;;  %1138 = vmatpush.msra.mxu1 %v1118_v11  ;;  %vm1109_vm14 = vmor %vm1107_vm13, %vm1108_vm12 }
 0x916   :  { %v991_v13 = vmul.f32 %v1877_v32, %v990_v39  ;;  %v1104_v16 = vsub.f32 1.0, %v1103_v40 }
 0x918   :  { %1802 = vmatmul.msk.f32.vlgmr.msrb.gmra.mxu1 %vm399_vm15, %v991_v13  ;;  %v1105_v18 = vmul.f32 %v1885_v10, %v1104_v16 }
 0x919   :  { %1265 = vmatpush.msrb.mxu1 %v2276_v44 }
 0x91a   :  { %1220 = vrot.lane.b32.xlu1 %v2179_v15, %s1997_s8  ;;  %v1106_v50 = vadd.f32 %v1885_v10, %v1105_v18 }
 0x91c   :  { %v1110_v19 = vsel %vm1109_vm14, %v1885_v10, %v1106_v50 }
 0x91d   :  { %v1115_v20 = vsel %vm1112_vm1, %v1114_v56, %v1110_v19 }
 0x91e   :  { %v1116_v22 = vmul.f32 %v1879_v41, %v1115_v20 }
 0x920   :  { %1807 = vmatmul.msk.f32.vlgmr.msra.gmra.mxu1 %vm399_vm15, %v1116_v22 }
 0x974   :  { %v1204_v23 = vpop.xlane.xlu1 %1203 }
 0x975   :  { %1886 = vrcp.f32 %v1204_v23  ;;  %v1216_v53 = vand.u32 2147483648, %v1204_v23  ;;  %vm1210_vm3 = vweird.f32 %v1204_v23  ;;  %v1214_v15 = vand.u32 2147483647, %v1204_v23 }
 0x977   :  { %v1217_v21 = vor.u32 1.1754944e-38, %v1216_v53  ;;  %vm1215_vm5 = vcmp.eq.f32.partialorder %v1214_v15, 8.507059e+37 }
 0x97b   :  { %v1887_v25 = vpop.eup %1886 }
 0x97c   :  { %v1206_v31 = vmul.f32 %v1887_v25, %v1204_v23  ;;  %vm1211_vm2 = vweird.f32 %v1887_v25 }
 0x97d   :  { %vm1212_vm4 = vmor %vm1210_vm3, %vm1211_vm2 }
 0x97e   :  { %v1207_v51 = vsub.f32 1.0, %v1206_v31 }
 0x980   :  { %v1208_v52 = vmul.f32 %v1887_v25, %v1207_v51 }
 0x982   :  { %v1209_v44 = vadd.f32 %v1887_v25, %v1208_v52 }
 0x984   :  { %v1213_v54 = vsel %vm1212_vm4, %v1887_v25, %v1209_v44 }
 0x985   :  { %v1218_v32 = vsel %vm1215_vm5, %v1217_v21, %v1213_v54 }
 0x986   :  { %v1219_v33 = vmul.f32 %v1881_v48, %v1218_v32 }
 0x98c   :  { %v1221_v24 = vpop.permute.xlu1 %1220 }
 0x98d   :  { %1241 = vmatpush.msrb.mxu2 %v1221_v24 }
 0x98e   :  { %1811 = vmatmul.msk.f32.vlgmr.msrb.gmra.mxu2 %vm399_vm15, %v1219_v33 }
 0x995   :  { %v1015_v34 = vpop.f32.mrf.mxu1 }
 0x996   :  { %1803 = vmatmul.msk.f32.vlgmr.msra.gmra.mxu3 %vm399_vm15, %v1015_v34 }
 0x99d   :  { %v1140_v35 = vpop.f32.mrf.mxu1 }
 0x99e   :  { %1808 = vmatmul.msk.f32.vlgmr.msrb.gmra.mxu3 %vm399_vm15, %v1140_v35 }
 0xa11   :  { %v1243_v36 = vpop.f32.mrf.mxu2 }
 0xa12   :  { %1812 = vmatmul.msk.f32.vlgmr.msrb.gmra.mxu1 %vm399_vm15, %v1243_v36 }
 0xa19   :  { %v1039_v41 = vpop.f32.mrf.mxu3 }
 0xa1a   :  { %v1063_v43 = vadd.f32 %v2284_v59, %v1039_v41 }
 0xa21   :  { %v1164_v42 = vpop.f32.mrf.mxu3 }
 0xa22   :  { %v1167_v45 = vadd.f32 %v1164_v42, %v1063_v43 }
 0xa8f   :  { %v1267_v47 = vpop.f32.mrf.mxu1 }
 0xa90   :  { %v1270_v49 = vadd.f32 %v1267_v47, %v1167_v45 }
 0xa92   :  { %v1272_v48 = vrot.slane %v1270_v49, 7  ;;  %v1273_v57 = vrot.slane %v1270_v49, 1  ;;  %v1274_v58 = vrot.slane %v1270_v49, 2  ;;  %v1275_v55 = vrot.slane %v1270_v49, 3 }
 0xa93   :  { %v1276_v61 = vrot.slane %v1270_v49, 4  ;;  %v1277_v62 = vrot.slane %v1270_v49, 5  ;;  %v1278_v63 = vrot.slane %v1270_v49, 6  ;;  %v1288_v8 = vadd.f32 %v1270_v49, %v2056_v5 }
 0xa94   :  { %v1287_v9 = vadd.f32 %v1272_v48, %v2053_v4  ;;  %v1289_v37 = vadd.f32 %v1273_v57, %v2058_v6  ;;  %v1290_v60 = vadd.f32 %v1274_v58, %v2061_v7  ;;  %v1291_v59 = vadd.f32 %v1275_v55, %v2043_v0 }
 0xa95   :  { %v1292_v14 = vadd.f32 %v1276_v61, %v2045_v1  ;;  %v1293_v10 = vadd.f32 %v1277_v62, %v2047_v2  ;;  %v1296_v38 = vadd.f32 %v2290_v12, %v1288_v8  ;;  %v1294_v39 = vadd.f32 %v1278_v63, %v2049_v3 }
 0xa96   :  { %v1295_v40 = vadd.f32 %v2290_v12, %v1287_v9  ;;  %v1297_v5 = vadd.f32 %v2290_v12, %v1289_v37  ;;  %v1298_v4 = vadd.f32 %v2290_v12, %v1290_v60  ;;  %v1299_v6 = vadd.f32 %v2290_v12, %v1291_v59 }
 0xa97   :  { %1305 = vst.msk [vmem:[#allocation7 + $0x2] sm:$0x2] %vm1303_vm6, %v1296_v38  ;;  %v1300_v0 = vadd.f32 %v2290_v12, %v1292_v14  ;;  %v1301_v1 = vadd.f32 %v2290_v12, %v1293_v10  ;;  %v1302_v2 = vadd.f32 %v2290_v12, %v1294_v39  ;;  %v1555_v38 = vld [vmem:[%s2532_s3 + $0x18] sm:$0xff]  ;;  %v1554_v39 = vld [vmem:[%s2532_s3 + $0x10] sm:$0xff] }
 0xa98   :  { %1304 = vst.msk [vmem:[#allocation7] sm:$0x2] %vm1303_vm6, %v1295_v40  ;;  %1598 = vmatpush.msra.mxu3 %v1555_v38  ;;  %v1553_v40 = vld [vmem:[%s2532_s3 + $0x8] sm:$0xff] }
 0xa99   :  { %1306 = vst.msk [vmem:[#allocation7 + $0x4] sm:$0x2] %vm1303_vm6, %v1297_v5 }
 0xa9a   :  { %1307 = vst.msk [vmem:[#allocation7 + $0x6] sm:$0x2] %vm1303_vm6, %v1298_v4  ;;  %1599 = vmatpush.msra.mxu3 %v1554_v39 }
 0xa9b   :  { %1308 = vst.msk [vmem:[#allocation7 + $0x8] sm:$0x2] %vm1303_vm6, %v1299_v6 }
 0xa9c   :  { %1309 = vst.msk [vmem:[#allocation7 + $0xa] sm:$0x2] %vm1303_vm6, %v1300_v0  ;;  %1600 = vmatpush.msra.mxu3 %v1553_v40 }
 0xa9d   :  { %1310 = vst.msk [vmem:[#allocation7 + $0xc] sm:$0x2] %vm1303_vm6, %v1301_v1 }
 0xa9e   :  { %1311 = vst.msk [vmem:[#allocation7 + $0xe] sm:$0x2] %vm1303_vm6, %v1302_v2  ;;  %v2357_v3 = vld [vmem:[#allocation7 + $0x2] sm:$0x3]  ;;  %vm1698_vm6 = vcmask 523264  }
 0xa9f   :  { %v2359_v7 = vld [vmem:[#allocation7] sm:$0x3]  ;;  %1330 = vst [vmem:[#allocation1 + $0x1] ss:$4 sm:$0xff] %v2357_v3 }
 0xaa0   :  { %v2362_v11 = vld [vmem:[#allocation7 + $0x4] sm:$0x3]  ;;  %1328 = vst [vmem:[#allocation1] ss:$4 sm:$0xff] %v2359_v7 }
 0xaa1   :  { %v2365_v12 = vld [vmem:[#allocation7 + $0x6] sm:$0x3]  ;;  %1332 = vst [vmem:[#allocation1 + $0x2] ss:$4 sm:$0xff] %v2362_v11 }
 0xaa2   :  { %v2368_v13 = vld [vmem:[#allocation7 + $0x8] sm:$0x3]  ;;  %1334 = vst [vmem:[#allocation1 + $0x3] ss:$4 sm:$0xff] %v2365_v12 }
 0xaa3   :  { %v2371_v16 = vld [vmem:[#allocation7 + $0xa] sm:$0x3]  ;;  %1336 = vst [vmem:[#allocation1 + $0x20] ss:$4 sm:$0xff] %v2368_v13 }
 0xaa4   :  { %v2374_v17 = vld [vmem:[#allocation7 + $0xc] sm:$0x3]  ;;  %1338 = vst [vmem:[#allocation1 + $0x21] ss:$4 sm:$0xff] %v2371_v16 }
 0xaa5   :  { %v2377_v18 = vld [vmem:[#allocation7 + $0xe] sm:$0x3]  ;;  %1340 = vst [vmem:[#allocation1 + $0x22] ss:$4 sm:$0xff] %v2374_v17 }
 0xaa6   :  { %1342 = vst [vmem:[#allocation1 + $0x23] ss:$4 sm:$0xff] %v2377_v18 }
 0xaa9   :  { %v1343_v46 = vld.sshfl [vmem:[#allocation1] sm:$0xff pattern:$0x73625140] }
 0xaaa   :  { %v1347_v50 = vsel %vm97_vm0, %v1343_v46, 0.0 }
 0xaab   :  { %1348 = vadd.xlane.f32.xlu0 %v1347_v50  ;;  %v1846_v50 = vld [vmem:[#allocation5 + $0x2] ss:$0 sm:$0xff] }
 0xaad   :  { %v1344_v56 = vld.sshfl [vmem:[#allocation1 + $0x20] sm:$0xff pattern:$0x73625140] }
 0xaae   :  { %v1350_v19 = vsel %vm97_vm0, %v1344_v56, 0.0 }
 0xaaf   :  { %1351 = vadd.xlane.f32.xlu2 %v1350_v19  ;;  %v1847_v19 = vld [vmem:[#allocation5 + $0x3] ss:$0 sm:$0xff] }
 0xb1e   :  { %v1349_v20 = vpop.xlane.xlu0 %1348 }
 0xb1f   :  { %v1353_v22 = vmul.f32 %v1349_v20, %v2069_v26 }
 0xb21   :  { %v1360_v23 = vperm.slane %v1353_v22, %v2071_v27  ;;  %v1364_v25 = vperm.slane %v1353_v22, %v2073_v28  ;;  %v1368_v31 = vperm.slane %v1353_v22, %v2075_v29  ;;  %v1372_v52 = vperm.slane %v1353_v22, %v2077_v30 }
 0xb22   :  { %v1352_v51 = vpop.xlane.xlu2 %1351 }
 0xb23   :  { %v1354_v44 = vmul.f32 %v1352_v51, %v2069_v26  ;;  %v2390_v53 = vsub.f32 %v2359_v7, %v1360_v23  ;;  %v2393_v15 = vsub.f32 %v2357_v3, %v1364_v25  ;;  %v2396_v54 = vsub.f32 %v2362_v11, %v1368_v31 }
 0xb24   :  { %v2403_v34 = vsub.f32 %v2365_v12, %v1372_v52  ;;  %v1522_v25 = vrot.slane %v1846_v50, 2  ;;  %v1523_v31 = vrot.slane %v1846_v50, 4  ;;  %v1524_v52 = vrot.slane %v1846_v50, 6 }
 0xb25   :  { %v1376_v21 = vperm.slane %v1354_v44, %v2071_v27  ;;  %v1380_v32 = vperm.slane %v1354_v44, %v2073_v28  ;;  %v1384_v24 = vperm.slane %v1354_v44, %v2075_v29  ;;  %v1388_v33 = vperm.slane %v1354_v44, %v2077_v30 }
 0xb26   :  { %v1405_v35 = vmul.f32 %v2390_v53, %v2390_v53  ;;  %v1406_v36 = vmul.f32 %v2393_v15, %v2393_v15  ;;  %v1407_v41 = vmul.f32 %v2396_v54, %v2396_v54  ;;  %v1408_v55 = vmul.f32 %v2403_v34, %v2403_v34 }
 0xb27   :  { %v2412_v42 = vsub.f32 %v2368_v13, %v1376_v21  ;;  %v2415_v43 = vsub.f32 %v2371_v16, %v1380_v32  ;;  %v2418_v45 = vsub.f32 %v2374_v17, %v1384_v24  ;;  %v2421_v47 = vsub.f32 %v2377_v18, %v1388_v33 }
 0xb28   :  { %1421 = vst [vmem:[#allocation1] ss:$4 sm:$0xff] %v1405_v35  ;;  %v1538_v44 = vrot.slane %v1847_v19, 2  ;;  %v1539_v21 = vrot.slane %v1847_v19, 4 }
 0xb29   :  { %v1409_v49 = vmul.f32 %v2412_v42, %v2412_v42  ;;  %v1410_v48 = vmul.f32 %v2415_v43, %v2415_v43  ;;  %v1411_v57 = vmul.f32 %v2418_v45, %v2418_v45  ;;  %1423 = vst [vmem:[#allocation1 + $0x1] ss:$4 sm:$0xff] %v1406_v36  ;;  %v1412_v58 = vmul.f32 %v2421_v47, %v2421_v47 }
 0xb2a   :  { %1425 = vst [vmem:[#allocation1 + $0x2] ss:$4 sm:$0xff] %v1407_v41 }
 0xb2b   :  { %1429 = vst [vmem:[#allocation1 + $0x20] ss:$4 sm:$0xff] %v1409_v49 }
 0xb2c   :  { %1431 = vst [vmem:[#allocation1 + $0x21] ss:$4 sm:$0xff] %v1410_v48 }
 0xb2d   :  { %1433 = vst [vmem:[#allocation1 + $0x22] ss:$4 sm:$0xff] %v1411_v57 }
 0xb2e   :  { %1435 = vst [vmem:[#allocation1 + $0x23] ss:$4 sm:$0xff] %v1412_v58 }
 0xb2f   :  { %1427 = vst [vmem:[#allocation1 + $0x3] ss:$4 sm:$0xff] %v1408_v55 }
 0xb35   :  { %v1437_v61 = vld.sshfl [vmem:[#allocation1 + $0x20] sm:$0xff pattern:$0x73625140] }
 0xb36   :  { %v1443_v62 = vsel %vm97_vm0, %v1437_v61, 0.0  ;;  %v1436_v63 = vld.sshfl [vmem:[#allocation1] sm:$0xff pattern:$0x73625140] }
 0xb37   :  { %1444 = vadd.xlane.f32.xlu0 %v1443_v62  ;;  %v1440_v8 = vsel %vm97_vm0, %v1436_v63, 0.0 }
 0xb38   :  { %1441 = vadd.xlane.f32.xlu1 %v1440_v8 }
 0xbaa   :  { %v1445_v9 = vpop.xlane.xlu0 %1444 }
 0xbab   :  { %v1442_v37 = vpop.xlane.xlu1 %1441  ;;  %v1447_v60 = vmul.f32 %v1445_v9, %v2069_v26  ;;  %v1540_v9 = vrot.slane %v1847_v19, 6 }
 0xbac   :  { %v1446_v59 = vmul.f32 %v1442_v37, %v2069_v26  ;;  %v1552_v26 = vld [vmem:[%s2532_s3] sm:$0xff] }
 0xbad   :  { %v1449_v14 = vadd.f32 1e-05, %v1447_v60  ;;  %1601 = vmatpush.msra.mxu3 %v1552_v26 }
 0xbae   :  { %v1448_v10 = vadd.f32 1e-05, %v1446_v59 }
 0xbaf   :  { %1888 = vrsqrt.f32 %v1449_v14  ;;  %vm1466_vm8 = vweird.f32 %v1449_v14 }
 0xbb0   :  { %1890 = vrsqrt.f32 %v1448_v10  ;;  %vm1456_vm9 = vweird.f32 %v1448_v10 }
 0xbb5   :  { %v1889_v5 = vpop.eup %1888 }
 0xbb6   :  { %v1891_v4 = vpop.eup %1890  ;;  %v1461_v6 = vmul.f32 %v1889_v5, %v1449_v14  ;;  %vm1467_vm15 = vweird.f32 %v1889_v5 }
 0xbb7   :  { %v1451_v0 = vmul.f32 %v1891_v4, %v1448_v10  ;;  %vm1457_vm7 = vweird.f32 %v1891_v4  ;;  %vm1468_vm10 = vmor %vm1466_vm8, %vm1467_vm15 }
 0xbb8   :  { %v1462_v1 = vmul.f32 %v1889_v5, %v1461_v6  ;;  %vm1458_vm11 = vmor %vm1456_vm9, %vm1457_vm7  ;;  %vm1750_vm7 = vcmask 254976  }
 0xbb9   :  { %v1452_v2 = vmul.f32 %v1891_v4, %v1451_v0 }
 0xbba   :  { %v1463_v46 = vmul.f32 0.5, %v1462_v1 }
 0xbbb   :  { %v1453_v56 = vmul.f32 0.5, %v1452_v2 }
 0xbbc   :  { %v1464_v20 = vsub.f32 1.5, %v1463_v46 }
 0xbbd   :  { %v1454_v22 = vsub.f32 1.5, %v1453_v56 }
 0xbbe   :  { %v1465_v23 = vmul.f32 %v1889_v5, %v1464_v20  ;;  %v1696_v20 = vld [vmem:[%s2533_s4 + $0x38] sm:$0xff] }
 0xbbf   :  { %v1455_v51 = vmul.f32 %v1891_v4, %v1454_v22  ;;  %1713 = vmatpush.msra.mxu0 %v1696_v20 }
 0xbc0   :  { %v1469_v32 = vsel %vm1468_vm10, %v1889_v5, %v1465_v23  ;;  %v1848_v5 = vld [vmem:[#allocation5 + $0x6] ss:$0 sm:$0xff]  ;;  %v1695_v23 = vld [vmem:[%s2533_s4 + $0x30] sm:$0xff] }
 0xbc1   :  { %v1459_v24 = vsel %vm1458_vm11, %v1891_v4, %v1455_v51  ;;  %v1491_v33 = vperm.slane %v1469_v32, %v2071_v27  ;;  %v1495_v35 = vperm.slane %v1469_v32, %v2073_v28  ;;  %v1499_v36 = vperm.slane %v1469_v32, %v2075_v29  ;;  %1714 = vmatpush.msra.mxu0 %v1695_v23 }
 0xbc2   :  { %v1475_v41 = vperm.slane %v1459_v24, %v2071_v27  ;;  %v1479_v49 = vperm.slane %v1459_v24, %v2073_v28  ;;  %v1483_v48 = vperm.slane %v1459_v24, %v2075_v29  ;;  %v1487_v57 = vperm.slane %v1459_v24, %v2077_v30  ;;  %v1692_v24 = vld [vmem:[%s2533_s4 + $0x18] sm:$0xff] }
 0xbc3   :  { %v1503_v58 = vperm.slane %v1469_v32, %v2077_v30  ;;  %v1516_v55 = vmul.f32 %v1491_v33, %v2412_v42  ;;  %v1517_v61 = vmul.f32 %v1495_v35, %v2415_v43  ;;  %v1518_v62 = vmul.f32 %v1499_v36, %v2418_v45 }
 0xbc4   :  { %v1512_v63 = vmul.f32 %v1475_v41, %v2390_v53  ;;  %v1513_v8 = vmul.f32 %v1479_v49, %v2393_v15  ;;  %v1514_v27 = vmul.f32 %v1483_v48, %v2396_v54  ;;  %v1515_v28 = vmul.f32 %v1487_v57, %v2403_v34  ;;  %v1691_v41 = vld [vmem:[%s2533_s4 + $0x10] sm:$0xff]  ;;  %v1690_v49 = vld [vmem:[%s2533_s4 + $0x8] sm:$0xff]  ;;  %v1689_v57 = vld [vmem:[%s2533_s4] sm:$0xff] }
 0xbc5   :  { %v1519_v29 = vmul.f32 %v1503_v58, %v2421_v47  ;;  %v1532_v37 = vmul.f32 %v1846_v50, %v1516_v55  ;;  %v1533_v60 = vmul.f32 %v1522_v25, %v1517_v61  ;;  %v1534_v43 = vmul.f32 %v1523_v31, %v1518_v62 }
 0xbc6   :  { %v1528_v30 = vmul.f32 %v1846_v50, %v1512_v63  ;;  %v1529_v59 = vmul.f32 %v1522_v25, %v1513_v8  ;;  %v1530_v42 = vmul.f32 %v1523_v31, %v1514_v27  ;;  %v1531_v14 = vmul.f32 %v1524_v52, %v1515_v28  ;;  %v1694_v31 = vld [vmem:[%s2533_s4 + $0x28] sm:$0xff] }
 0xbc7   :  { %v1548_v10 = vadd.f32 %v1847_v19, %v1532_v37  ;;  %v1535_v39 = vmul.f32 %v1524_v52, %v1519_v29  ;;  %v1549_v54 = vadd.f32 %v1538_v44, %v1533_v60  ;;  %v1550_v34 = vadd.f32 %v1539_v21, %v1534_v43  ;;  %1715 = vmatpush.msra.mxu0 %v1694_v31 }
 0xbc8   :  { %v1544_v45 = vadd.f32 %v1847_v19, %v1528_v30  ;;  %v1545_v38 = vadd.f32 %v1538_v44, %v1529_v59  ;;  %v1546_v53 = vadd.f32 %v1539_v21, %v1530_v42  ;;  %v1547_v15 = vadd.f32 %v1540_v9, %v1531_v14  ;;  %v1693_v21 = vld [vmem:[%s2533_s4 + $0x20] sm:$0xff]  ;;  %s1998_s4 = smov [#allocation7]  }
 0xbc9   :  { %1573 = vst [vmem:[#allocation1 + $0x20] ss:$4 sm:$0xff] %v1548_v10  ;;  %v1551_v47 = vadd.f32 %v1540_v9, %v1535_v39  ;;  %1716 = vmatpush.msra.mxu0 %v1693_v21  ;;  %s1763_s8 = sshll.u32 %s1998_s4, 4  ;;  %s1764_s8 = int_to_ptr.vmem [resolvable:$true] %s1763_s8 }
 0xbca   :  { %1565 = vst [vmem:[#allocation1] ss:$4 sm:$0xff] %v1544_v45 }
 0xbcb   :  { %1567 = vst [vmem:[#allocation1 + $0x1] ss:$4 sm:$0xff] %v1545_v38  ;;  %1717 = vmatpush.msra.mxu0 %v1692_v24 }
 0xbcc   :  { %1569 = vst [vmem:[#allocation1 + $0x2] ss:$4 sm:$0xff] %v1546_v53 }
 0xbcd   :  { %1571 = vst [vmem:[#allocation1 + $0x3] ss:$4 sm:$0xff] %v1547_v15  ;;  %1718 = vmatpush.msra.mxu0 %v1691_v41 }
 0xbce   :  { %1575 = vst [vmem:[#allocation1 + $0x21] ss:$4 sm:$0xff] %v1549_v54 }
 0xbcf   :  { %1577 = vst [vmem:[#allocation1 + $0x22] ss:$4 sm:$0xff] %v1550_v34  ;;  %1719 = vmatpush.msra.mxu0 %v1690_v49 }
 0xbd0   :  { %1579 = vst [vmem:[#allocation1 + $0x23] ss:$4 sm:$0xff] %v1551_v47 }
 0xbd1   :  { %1720 = vmatpush.msra.mxu0 %v1689_v57 }
 0xbd4   :  { %v1580_v40 = vld.sshfl [vmem:[#allocation1] sm:$0xff pattern:$0x73625140] }
 0xbd5   :  { %1813 = vmatmul.msk.f32.vlgmr.msra.gmra.mxu3 %vm97_vm0, %v1580_v40 }
 0xbd7   :  { %v1581_v26 = vld.sshfl [vmem:[#allocation1 + $0x20] sm:$0xff pattern:$0x73625140] }
 0xbdd   :  { %1814 = vmatmul.msk.f32.gmra.mxu3 %vm97_vm0, %v1581_v26 }
 0xc58   :  { %v1603_v4 = vpop.f32.mrf.mxu3 }
 0xc59   :  { %v2467_v6 = vadd.f32 %v1848_v5, %v1603_v4 }
 0xc5b   :  { %v2470_v0 = vmul.f32 0.70710677, %v2467_v6  ;;  %v1609_v21 = vmul.f32 0.5, %v2467_v6 }
 0xc5d   :  { %v1613_v1 = vand.u32 2147483647, %v2470_v0  ;;  %vm1679_vm5 = vcmp.ge.f32.partialorder %v2470_v0, 0.0 }
 0xc5f   :  { %v1615_v2 = vmul.f32 0.3275911, %v1613_v1  ;;  %v1667_v63 = vsub.f32 0.0, %v1613_v1 }
 0xc60   :  { %v1606_v46 = vpop.f32.mrf.mxu3 }
 0xc61   :  { %v1617_v50 = vadd.f32 1.0, %v1615_v2  ;;  %v2473_v56 = vadd.f32 %v1848_v5, %v1606_v46  ;;  %v1669_v37 = vmul.f32 %v1667_v63, %v1613_v1 }
 0xc63   :  { %1892 = vrcp.f32 %v1617_v50  ;;  %v2476_v19 = vmul.f32 0.70710677, %v2473_v56  ;;  %v1630_v33 = vand.u32 2147483648, %v1617_v50  ;;  %v1628_v36 = vand.u32 2147483647, %v1617_v50 }
 0xc64   :  { %vm1624_vm12 = vweird.f32 %v1617_v50  ;;  %v1671_v10 = vmul.f32 1.442695, %v1669_v37 }
 0xc65   :  { %v1614_v22 = vand.u32 2147483647, %v2476_v19  ;;  %v1631_v58 = vor.u32 1.1754944e-38, %v1630_v33  ;;  %vm1629_vm14 = vcmp.eq.f32.partialorder %v1628_v36, 8.507059e+37  ;;  %vm1680_vm15 = vcmp.ge.f32.partialorder %v2476_v19, 0.0 }
 0xc67   :  { %v1616_v25 = vmul.f32 0.3275911, %v1614_v22  ;;  %v1668_v53 = vsub.f32 0.0, %v1614_v22 }
 0xc69   :  { %v1893_v51 = vpop.eup %1892  ;;  %v1618_v44 = vadd.f32 1.0, %v1616_v25  ;;  %v1670_v40 = vmul.f32 %v1668_v53, %v1614_v22 }
 0xc6a   :  { %v1620_v52 = vmul.f32 %v1893_v51, %v1617_v50  ;;  %vm1625_vm0 = vweird.f32 %v1893_v51 }
 0xc6b   :  { %1894 = vrcp.f32 %v1618_v44  ;;  %vm1626_vm13 = vmor %vm1624_vm12, %vm1625_vm0  ;;  %v1645_v29 = vand.u32 2147483648, %v1618_v44  ;;  %v1643_v30 = vand.u32 2147483647, %v1618_v44  ;;  %vm1639_vm2 = vweird.f32 %v1618_v44 }
 0xc6c   :  { %v1621_v32 = vsub.f32 1.0, %v1620_v52  ;;  %1896 = vpow2.f32 %v1671_v10  ;;  %v1673_v2 = vmul.f32 1.442695, %v1670_v40 }
 0xc6d   :  { %v1646_v43 = vor.u32 1.1754944e-38, %v1645_v29  ;;  %vm1644_vm4 = vcmp.eq.f32.partialorder %v1643_v30, 8.507059e+37 }
 0xc6e   :  { %v1622_v35 = vmul.f32 %v1893_v51, %v1621_v32  ;;  %1898 = vpow2.f32 %v1673_v2 }
 0xc70   :  { %v1623_v48 = vadd.f32 %v1893_v51, %v1622_v35 }
 0xc71   :  { %v1895_v55 = vpop.eup %1894 }
 0xc72   :  { %v1627_v61 = vsel %vm1626_vm13, %v1893_v51, %v1623_v48  ;;  %v1635_v8 = vmul.f32 %v1895_v55, %v1618_v44  ;;  %vm1640_vm1 = vweird.f32 %v1895_v55  ;;  %v1897_v46 = vpop.eup %1896  ;;  %v1610_v48 = vmul.f32 0.5, %v2473_v56 }
 0xc73   :  { %v1632_v62 = vsel %vm1629_vm14, %v1631_v58, %v1627_v61  ;;  %vm1641_vm3 = vmor %vm1639_vm2, %vm1640_vm1  ;;  %v1849_v58 = vld [vmem:[#allocation5 + $0x7] ss:$0 sm:$0xff] }
 0xc74   :  { %v1649_v27 = vmul.f32 1.0614054, %v1632_v62  ;;  %v1636_v28 = vsub.f32 1.0, %v1635_v8  ;;  %v1899_v24 = vpop.eup %1898 }
 0xc76   :  { %v1651_v9 = vadd.f32 -1.4531521, %v1649_v27  ;;  %v1637_v60 = vmul.f32 %v1895_v55, %v1636_v28 }
 0xc78   :  { %v1653_v59 = vmul.f32 %v1651_v9, %v1632_v62  ;;  %v1638_v42 = vadd.f32 %v1895_v55, %v1637_v60 }
 0xc7a   :  { %v1655_v14 = vadd.f32 1.4214138, %v1653_v59  ;;  %v1642_v45 = vsel %vm1641_vm3, %v1895_v55, %v1638_v42 }
 0xc7b   :  { %v1647_v39 = vsel %vm1644_vm4, %v1646_v43, %v1642_v45 }
 0xc7c   :  { %v1657_v38 = vmul.f32 %v1655_v14, %v1632_v62  ;;  %v1650_v15 = vmul.f32 1.0614054, %v1647_v39 }
 0xc7e   :  { %v1659_v54 = vadd.f32 -0.28449672, %v1657_v38  ;;  %v1652_v34 = vadd.f32 -1.4531521, %v1650_v15 }
 0xc80   :  { %v1661_v47 = vmul.f32 %v1659_v54, %v1632_v62  ;;  %v1654_v26 = vmul.f32 %v1652_v34, %v1647_v39 }
 0xc82   :  { %v1663_v5 = vadd.f32 0.2548296, %v1661_v47  ;;  %v1656_v4 = vadd.f32 1.4214138, %v1654_v26 }
 0xc84   :  { %v1665_v1 = vmul.f32 %v1663_v5, %v1632_v62  ;;  %v1658_v50 = vmul.f32 %v1656_v4, %v1647_v39 }
 0xc86   :  { %v1675_v20 = vmul.f32 %v1897_v46, %v1665_v1  ;;  %v1660_v23 = vadd.f32 -0.28449672, %v1658_v50 }
 0xc88   :  { %v1677_v25 = vsub.f32 1.0, %v1675_v20  ;;  %v1662_v31 = vmul.f32 %v1660_v23, %v1647_v39 }
 0xc8a   :  { %v1681_v51 = vsub.f32 0.0, %v1677_v25  ;;  %v1664_v52 = vadd.f32 0.2548296, %v1662_v31 }
 0xc8c   :  { %v1683_v44 = vsel %vm1679_vm5, %v1677_v25, %v1681_v51  ;;  %v1666_v32 = vmul.f32 %v1664_v52, %v1647_v39 }
 0xc8d   :  { %v1685_v22 = vadd.f32 1.0, %v1683_v44 }
 0xc8e   :  { %v1676_v35 = vmul.f32 %v1899_v24, %v1666_v32 }
 0xc8f   :  { %v1687_v33 = vmul.f32 %v1685_v22, %v1609_v21 }
 0xc90   :  { %v1678_v36 = vsub.f32 1.0, %v1676_v35 }
 0xc91   :  { %1815 = vmatmul.msk.f32.vlgmr.msra.gmra.mxu0 %vm1698_vm6, %v1687_v33 }
 0xc92   :  { %v1682_v41 = vsub.f32 0.0, %v1678_v36 }
 0xc94   :  { %v1684_v49 = vsel %vm1680_vm15, %v1678_v36, %v1682_v41 }
 0xc95   :  { %v1686_v57 = vadd.f32 1.0, %v1684_v49 }
 0xc97   :  { %v1688_v0 = vmul.f32 %v1686_v57, %v1610_v48 }
 0xc99   :  { %1816 = vmatmul.msk.f32.gmra.mxu0 %vm1698_vm6, %v1688_v0 }
 0xd0e   :  { %v1722_v55 = vpop.f32.mrf.mxu0 }
 0xd0f   :  { %v1723_v6 = vadd.f32 %v1849_v58, %v1722_v55 }
 0xd11   :  { %v1730_v61 = vrot.slane %v1723_v6, 2  ;;  %v1731_v62 = vrot.slane %v1723_v6, 4  ;;  %v1732_v63 = vrot.slane %v1723_v6, 6  ;;  %v1742_v8 = vadd.f32 %v1723_v6, %v2359_v7 }
 0xd13   :  { %v1743_v27 = vadd.f32 %v1730_v61, %v2357_v3  ;;  %v1744_v28 = vadd.f32 %v1731_v62, %v2362_v11  ;;  %v1745_v19 = vadd.f32 %v1732_v63, %v2365_v12  ;;  %1751 = vst.msk [vmem:[#allocation7] sm:$0x3] %vm1750_vm7, %v1742_v8 }
 0xd15   :  { %1752 = vst.msk [vmem:[#allocation7 + $0x2] sm:$0x3] %vm1750_vm7, %v1743_v27 }
 0xd16   :  { %1753 = vst.msk [vmem:[#allocation7 + $0x4] sm:$0x3] %vm1750_vm7, %v1744_v28  ;;  %v1725_v56 = vpop.f32.mrf.mxu0 }
 0xd17   :  { %1754 = vst.msk [vmem:[#allocation7 + $0x6] sm:$0x3] %vm1750_vm7, %v1745_v19  ;;  %v1726_v9 = vadd.f32 %v1849_v58, %v1725_v56 }
 0xd19   :  { %v1733_v29 = vrot.slane %v1726_v9, 2  ;;  %v1734_v37 = vrot.slane %v1726_v9, 4  ;;  %v1735_v60 = vrot.slane %v1726_v9, 6  ;;  %v1746_v7 = vadd.f32 %v1726_v9, %v2368_v13 }
 0xd1b   :  { %v1747_v3 = vadd.f32 %v1733_v29, %v2371_v16  ;;  %v1748_v11 = vadd.f32 %v1734_v37, %v2374_v17  ;;  %v1749_v12 = vadd.f32 %v1735_v60, %v2377_v18  ;;  %1755 = vst.msk [vmem:[#allocation7 + $0x8] sm:$0x3] %vm1750_vm7, %v1746_v7 }
 0xd1d   :  { %1756 = vst.msk [vmem:[#allocation7 + $0xa] sm:$0x3] %vm1750_vm7, %v1747_v3 }
 0xd1e   :  { %1757 = vst.msk [vmem:[#allocation7 + $0xc] sm:$0x3] %vm1750_vm7, %v1748_v11 }
 0xd1f   :  { %1758 = vst.msk [vmem:[#allocation7 + $0xe] sm:$0x3] %vm1750_vm7, %v1749_v12 }
 0xd20   :  { %1771 = dma.vmem_to_hbm [thread:$0]  %s1764_s8, 256, %s1766_s2, [#allocation4], %s1979_s29, %s1979_s29, %s1980_s30  }
 0xd21   :  { %1976 = dma.done.wait [#allocation4], 256  }
 0xd22   :  { %1977 = vsyncadd [#allocation4], 4294967040 }
 0xd23   :  { %1776 = vsyncpa [#allocation3], 1 }
 0xd24   :  { %1777 = vsyncpa [#allocation6], 1 }
 0xd25   :  { %1778 = vsyncpa [#allocation4], 1 }

</bundles_post_ra>
